<compile_context>
chip_gen: v7x
topology: tpu7x:2x2x1
jax: 0.10.0
libtpu: 0.0.40
codegen_flags: <defaults>
</compile_context>

<pallas_src>
import functools
import math

import jax
import jax.numpy as jnp
from jax.experimental import pallas as pl
from jax.experimental.pallas import tpu as pltpu

VMEM_LIMIT = 32 * 1024 * 1024  # safe on v5e (128 MiB phys), v6e (128), v7x (64)


# ---------------------------------------------------------------------------
# helpers
# ---------------------------------------------------------------------------

def _pick_tile(dim, candidates):
    """Largest candidate that divides `dim`, else the full extent (keeps (8,128) rule)."""
    for c in candidates:
        if c <= dim and dim % c == 0:
            return c
    return dim


# ---------------------------------------------------------------------------
# Pallas kernels
# ---------------------------------------------------------------------------

def _matmul_bias_kernel(x_ref, w_ref, b_ref, *rest, activation, has_residual,
                        has_ln, eps):
    """Tiled matmul + bias (+ReLU) (+residual) (+final LayerNorm epilogue).

    Grid = (M, N, K); K is the reduction axis with an f32 VMEM accumulator."""
    refs = list(rest)
    res_ref = refs.pop(0) if has_residual else None
    if has_ln:
        g_ref = refs.pop(0)
        be_ref = refs.pop(0)
    o_ref, acc_ref = refs

    @pl.when(pl.program_id(2) == 0)
    def _():
        acc_ref[...] = jnp.zeros_like(acc_ref)

    acc_ref[...] += jnp.dot(
        x_ref[...].astype(jnp.bfloat16),
        w_ref[...].astype(jnp.bfloat16),
        preferred_element_type=jnp.float32,
    )

    @pl.when(pl.program_id(2) == pl.num_programs(2) - 1)
    def _():
        acc = acc_ref[...] + b_ref[...]
        if activation == "relu":
            acc = jnp.maximum(acc, 0.0)
        if has_residual:
            acc = acc + res_ref[...].astype(jnp.float32)
        if has_ln:  # fused final encoder LayerNorm (tile covers the full N extent)
            mean = jnp.mean(acc, axis=-1, keepdims=True)
            var = jnp.mean((acc - mean) ** 2, axis=-1, keepdims=True)
            acc = (acc - mean) * jax.lax.rsqrt(var + eps)
            acc = acc * g_ref[...] + be_ref[...]
        o_ref[...] = acc.astype(o_ref.dtype)


def matmul_bias(x, w, b, residual=None, activation=None, ln_params=None,
                ln_eps=1e-5, out_dtype=jnp.float32):
    """x: (M, K) @ w: (K, N) + b, optional fused ReLU, residual add and LayerNorm."""
    M, K = x.shape
    K2, N = w.shape
    assert K == K2
    tm = _pick_tile(M, (256, 128, 64, 32, 16, 8))
    tn = _pick_tile(N, (512, 384, 256, 128))
    tk = _pick_tile(K, (512, 256, 128))
    has_res = residual is not None
    has_ln = ln_params is not None
    if has_ln:
        assert tn == N, "fused LayerNorm epilogue needs the full N extent per tile"

    in_specs = [
        pl.BlockSpec((tm, tk), lambda i, j, k: (i, k)),
        pl.BlockSpec((tk, tn), lambda i, j, k: (k, j)),
        pl.BlockSpec((1, tn), lambda i, j, k: (0, j)),
    ]
    args = [x, w, b.reshape(1, N)]
    if has_res:
        in_specs.append(pl.BlockSpec((tm, tn), lambda i, j, k: (i, j)))
        args.append(residual)
    if has_ln:
        g, be = ln_params
        in_specs += [pl.BlockSpec((1, tn), lambda i, j, k: (0, j)),
                     pl.BlockSpec((1, tn), lambda i, j, k: (0, j))]
        args += [g.reshape(1, N), be.reshape(1, N)]

    # TODO(synk): on v5e consider pipeline_mode=pl.Buffered(3) on the weight BlockSpec
    # (weight-streaming bound); on v7x mark the M axis CORE_PARALLEL / use core_map.
    kernel = functools.partial(_matmul_bias_kernel, activation=activation,
                               has_residual=has_res, has_ln=has_ln, eps=ln_eps)
    return pl.pallas_call(
        kernel,
        out_shape=jax.ShapeDtypeStruct((M, N), out_dtype),
        grid=(M // tm, N // tn, K // tk),
        in_specs=in_specs,
        out_specs=pl.BlockSpec((tm, tn), lambda i, j, k: (i, j)),
        scratch_shapes=[pltpu.VMEM((tm, tn), jnp.float32)],
        compiler_params=pltpu.CompilerParams(
            dimension_semantics=("parallel", "parallel", "arbitrary"),
            vmem_limit_bytes=VMEM_LIMIT),
    )(*args)


def _ln_matmul_kernel(x_ref, g_ref, b_ref, w_ref, bias_ref, o_ref, xn_ref, *,
                      eps, activation):
    """LayerNorm(x) @ w + bias (+ReLU).

    LN is computed only on the first N tile of each M tile and cached in a VMEM
    scratch (bf16) that is reused for all subsequent N tiles of the same rows."""
    @pl.when(pl.program_id(1) == 0)
    def _():
        x = x_ref[...].astype(jnp.float32)
        mean = jnp.mean(x, axis=-1, keepdims=True)
        var = jnp.mean((x - mean) ** 2, axis=-1, keepdims=True)  # biased, like torch
        xn = (x - mean) * jax.lax.rsqrt(var + eps)
        xn_ref[...] = (xn * g_ref[...] + b_ref[...]).astype(xn_ref.dtype)

    acc = jnp.dot(xn_ref[...], w_ref[...].astype(jnp.bfloat16),
                  preferred_element_type=jnp.float32)
    acc = acc + bias_ref[...]
    if activation == "relu":
        acc = jnp.maximum(acc, 0.0)
    o_ref[...] = acc.astype(o_ref.dtype)


def ln_matmul_bias(x, gamma, beta, w, b, activation=None, eps=1e-5,
                   out_dtype=jnp.float32):
    """LayerNorm over last dim of x (M, D), then (M, D) @ (D, N) + b."""
    M, D = x.shape
    D2, N = w.shape
    assert D == D2
    tm = _pick_tile(M, (256, 128, 64, 32, 16, 8))
    tn = _pick_tile(N, (512, 384, 256, 128))
    kernel = functools.partial(_ln_matmul_kernel, eps=eps, activation=activation)
    return pl.pallas_call(
        kernel,
        out_shape=jax.ShapeDtypeStruct((M, N), out_dtype),
        grid=(M // tm, N // tn),
        in_specs=[
            pl.BlockSpec((tm, D), lambda i, j: (i, 0)),
            pl.BlockSpec((1, D), lambda i, j: (0, 0)),
            pl.BlockSpec((1, D), lambda i, j: (0, 0)),
            pl.BlockSpec((D, tn), lambda i, j: (0, j)),
            pl.BlockSpec((1, tn), lambda i, j: (0, j)),
        ],
        out_specs=pl.BlockSpec((tm, tn), lambda i, j: (i, j)),
        scratch_shapes=[pltpu.VMEM((tm, D), jnp.bfloat16)],
        compiler_params=pltpu.CompilerParams(
            # N axis is "arbitrary": j>0 tiles reuse the LN scratch written at j==0.
            dimension_semantics=("parallel", "arbitrary"),
            vmem_limit_bytes=VMEM_LIMIT),
    )(x, gamma.reshape(1, D), beta.reshape(1, D), w, b.reshape(1, N))


def _mha_kernel(qkv_ref, o_ref, *, aheads, scale):
    """All heads of one batch element; per-head results stored directly into o_ref."""
    qkv = qkv_ref[0]                                  # (T, 3D), bf16
    three_d = qkv.shape[-1]
    D = three_d // 3
    dk = D // aheads
    for h in range(aheads):                           # static small loop
        # 1/sqrt(dk) folded into the (T, dk) query slice instead of the (T, T) scores.
        qh = (qkv[:, h * dk:(h + 1) * dk] * scale).astype(jnp.bfloat16)
        kh = qkv[:, D + h * dk:D + (h + 1) * dk]
        vh = qkv[:, 2 * D + h * dk:2 * D + (h + 1) * dk]
        s = jax.lax.dot_general(
            qh, kh, (((1,), (1,)), ((), ())),         # q @ k^T (contract dk)
            preferred_element_type=jnp.float32)
        m = jnp.max(s, axis=-1, keepdims=True)
        p = jnp.exp(s - m)
        l = jnp.sum(p, axis=-1, keepdims=True)
        o = jnp.dot(p.astype(jnp.bfloat16), vh, preferred_element_type=jnp.float32)
        # deferred softmax normalization: scale the (T, dk) PV output, not (T, T) probs.
        o = o * pl.reciprocal(l, approx=True)
        o_ref[0, :, h * dk:(h + 1) * dk] = o.astype(o_ref.dtype)


def self_attention(qkv, aheads, out_dtype=jnp.float32):
    """qkv: (B, T, 3D) fused-projection output -> context (B, T, D)."""
    B, T, three_d = qkv.shape
    D = three_d // 3
    scale = 1.0 / math.sqrt(D // aheads)
    # TODO(synk): flash-style online-softmax kernel tiled over (query, KV) blocks for
    # long T (bounds the O(T^2) score matrix / VMEM on v7x's 64 MiB).
    # TODO(synk): head-major QKV column permutation to reduce 32-lane slice shuffles.
    kernel = functools.partial(_mha_kernel, aheads=aheads, scale=scale)
    return pl.pallas_call(
        kernel,
        out_shape=jax.ShapeDtypeStruct((B, T, D), out_dtype),
        grid=(B,),
        in_specs=[pl.BlockSpec((1, T, three_d), lambda b: (b, 0, 0))],
        out_specs=pl.BlockSpec((1, T, D), lambda b: (b, 0, 0)),
        compiler_params=pltpu.CompilerParams(
            dimension_semantics=("parallel",),
            vmem_limit_bytes=VMEM_LIMIT),
    )(qkv)


# ---------------------------------------------------------------------------
# Front-end (Conv2dSubsampling) and encoder layers
# ---------------------------------------------------------------------------

def positional_encoding(T, D):
    pos = jnp.arange(T, dtype=jnp.float32)[:, None]
    div = jnp.exp(jnp.arange(0, D, 2, dtype=jnp.float32) * -(math.log(10000.0) / D))
    pe = jnp.zeros((T, D), dtype=jnp.float32)
    pe = pe.at[:, 0::2].set(jnp.sin(pos * div))
    pe = pe.at[:, 1::2].set(jnp.cos(pos * div))
    return pe


def conv2d_subsampling(x, params, adim):
    """x: (B, T, idim) -> (B, T'', adim). Two stride-2 3x3 convs + Linear + PosEnc."""
    # TODO(synk): the 3x3 stride-2 convs use lax.conv_general_dilated (XLA/MXU) instead of
    # a dedicated Pallas conv kernel with overlapping blocks.
    B, T, F = x.shape
    h = x[:, :, :, None]                              # NHWC, C=1
    dn = ("NHWC", "HWIO", "NHWC")
    w1 = jnp.transpose(params["conv1_w"], (2, 3, 1, 0))   # (Cout,Cin,kh,kw)->(kh,kw,Cin,Cout)
    h = jax.lax.conv_general_dilated(h, w1, (2, 2), "VALID", dimension_numbers=dn)
    h = jnp.maximum(h + params["conv1_b"], 0.0)
    w2 = jnp.transpose(params["conv2_w"], (2, 3, 1, 0))
    h = jax.lax.conv_general_dilated(h, w2, (2, 2), "VALID", dimension_numbers=dn)
    h = jnp.maximum(h + params["conv2_b"], 0.0)
    B_, T2, F2, C = h.shape
    # No activation transpose: flatten f-major and permute the Linear weight rows once
    # (torch flattens channel-major: row index c*F2 + f -> our row index f*C + c).
    h = h.reshape(B_, T2, F2 * C)
    out_w_f = params["out_w"].reshape(C, F2, adim).transpose(1, 0, 2).reshape(F2 * C, adim)
    y = matmul_bias(h.reshape(-1, F2 * C), out_w_f, params["out_b"])
    y = y.reshape(B_, T2, adim)
    # PositionalEncoding: x * sqrt(d_model) + pe   (dropout = identity in eval)
    y = y * math.sqrt(adim) + positional_encoding(T2, adim)[None]
    return y


def encoder_layer(x, p, aheads, final_ln=None):
    """Pre-norm Transformer encoder layer (dropout = identity). 5 pallas_calls total.

    If final_ln=(gamma, beta) is given (last layer), the final encoder LayerNorm is
    fused into the FF2 matmul epilogue."""
    B, T, D = x.shape
    M = B * T
    x2 = x.reshape(M, D)
    # LN1 + fused Q/K/V projection (lane-dense N = 3D)
    qkv = ln_matmul_bias(x2, p["ln1_g"], p["ln1_b"], p["w_qkv"], p["b_qkv"],
                         out_dtype=jnp.bfloat16)
    # self-attention (all heads per batch element)
    ctx = self_attention(qkv.reshape(B, T, 3 * D), aheads, out_dtype=jnp.bfloat16)
    # output projection + residual add
    x2 = matmul_bias(ctx.reshape(M, D), p["wo"], p["bo"], residual=x2)
    # LN2 + FF1 (ReLU)
    h = ln_matmul_bias(x2, p["ln2_g"], p["ln2_b"], p["ff1_w"], p["ff1_b"],
                       activation="relu", out_dtype=jnp.bfloat16)
    # FF2 + residual add (+ fused final LayerNorm on the last layer)
    x2 = matmul_bias(h, p["ff2_w"], p["ff2_b"], residual=x2, ln_params=final_ln)
    return x2.reshape(B, T, D)


@functools.partial(jax.jit, static_argnames=("adim", "aheads"))
def encoder_forward(x, params, adim, aheads):
    """Encoder.forward(x, mask=None) -> (norm(x), None)."""
    # TODO(synk): mask propagation / masked softmax not implemented (mask=None path only).
    h = conv2d_subsampling(x, params["input_layer"], adim)
    layers = params["layers"]
    assert len(layers) >= 1
    last = len(layers) - 1
    for li, lp in enumerate(layers):
        fin = (params["norm_g"], params["norm_b"]) if li == last else None
        h = encoder_layer(h, lp, aheads, final_ln=fin)
    return h, None


# ---------------------------------------------------------------------------
# Deterministic parameter construction
# ---------------------------------------------------------------------------

def init_params(key, idim, adim, eunits, aheads, elayers):
    def nrm(k, shape, scale=0.02):
        return scale * jax.random.normal(k, shape, dtype=jnp.float32)

    keys = iter(jax.random.split(key, 64))
    f_sub = ((idim - 1) // 2 - 1) // 2           # freq dim after two stride-2 convs
    input_layer = {
        "conv1_w": nrm(next(keys), (adim, 1, 3, 3)),
        "conv1_b": jnp.zeros((adim,), jnp.float32),
        "conv2_w": nrm(next(keys), (adim, adim, 3, 3)),
        "conv2_b": jnp.zeros((adim,), jnp.float32),
        "out_w": nrm(next(keys), (adim * f_sub, adim)),   # torch channel-major row order
        "out_b": jnp.zeros((adim,), jnp.float32),
    }
    layers = []
    for _ in range(elayers):
        layers.append({
            # fused Q|K|V projection
            "w_qkv": nrm(next(keys), (adim, 3 * adim)),
            "b_qkv": jnp.zeros((3 * adim,), jnp.float32),
            "wo": nrm(next(keys), (adim, adim)), "bo": jnp.zeros((adim,), jnp.float32),
            "ff1_w": nrm(next(keys), (adim, eunits)), "ff1_b": jnp.zeros((eunits,), jnp.float32),
            "ff2_w": nrm(next(keys), (eunits, adim)), "ff2_b": jnp.zeros((adim,), jnp.float32),
            "ln1_g": jnp.ones((adim,), jnp.float32), "ln1_b": jnp.zeros((adim,), jnp.float32),
            "ln2_g": jnp.ones((adim,), jnp.float32), "ln2_b": jnp.zeros((adim,), jnp.float32),
        })
    return {
        "input_layer": input_layer,
        "layers": layers,
        "norm_g": jnp.ones((adim,), jnp.float32),
        "norm_b": jnp.zeros((adim,), jnp.float32),
    }


# ---------------------------------------------------------------------------
# Main
# ---------------------------------------------------------------------------

if __name__ == "__main__":
    # Small shapes consistent with the module (scaled down from adim=144/eunits=576),
    # chosen lane/sublane friendly: T=70 -> T''=16, so M = B*T'' = 32 (multiple of 8)
    # and adim is a multiple of 128 (no padded tail tiles).
    B, T, IDIM = 2, 70, 11
    ADIM, EUNITS, AHEADS, ELAYERS = 128, 256, 4, 2

    key = jax.random.PRNGKey(0)
    kx, kp = jax.random.split(key)
    x = jax.random.normal(kx, (B, T, IDIM), dtype=jnp.float32)
    params = init_params(kp, IDIM, ADIM, EUNITS, AHEADS, ELAYERS)

    out, mask = encoder_forward(x, params, adim=ADIM, aheads=AHEADS)
    out = jax.block_until_ready(out)

    T_sub = ((T - 1) // 2 - 1) // 2
    assert out.shape == (B, T_sub, ADIM), out.shape
    assert mask is None
    assert bool(jnp.all(jnp.isfinite(out)))
    print("KERNEL_OK")
</pallas_src>

<mosaic_0001>
module attributes {stable_mosaic.version = 11 : i64} {
  func.func @_matmul_bias_kernel(%arg0: i32, %arg1: i32, %arg2: i32, %arg3: memref<32x256xf32, #tpu.memory_space<vmem>>, %arg4: memref<256x128xf32, #tpu.memory_space<vmem>>, %arg5: memref<1x128xf32, #tpu.memory_space<vmem>>, %arg6: memref<32x128xf32, #tpu.memory_space<vmem>>, %arg7: memref<32x128xf32, #tpu.memory_space<vmem>>) attributes {dimension_semantics = [#tpu.dimension_semantics<parallel>, #tpu.dimension_semantics<parallel>, #tpu.dimension_semantics<arbitrary>], iteration_bounds = array<i64: 1, 1, 1>, scalar_prefetch = 0 : i64, scratch_operands = 1 : i64, tpu.core_type = #tpu.core_type<tc>, window_params = [{transform_indices = @transform_0, window_bounds = array<i64: 32, 256>}, {transform_indices = @transform_1, window_bounds = array<i64: 256, 128>}, {transform_indices = @transform_2, window_bounds = array<i64: 1, 128>}, {transform_indices = @transform_3, window_bounds = array<i64: 32, 128>}]} {
    %c0_i32 = arith.constant 0 : i32
    %0 = arith.cmpi eq, %arg2, %c0_i32 : i32
    %1 = arith.extui %0 : i1 to i32
    %c0_i32_0 = arith.constant 0 : i32
    %2 = arith.cmpi ne, %1, %c0_i32_0 : i32
    scf.if %2 {
      %cst_10 = arith.constant 0.000000e+00 : f32
      %14 = vector.broadcast %cst_10 : f32 to vector<32x128xf32>
      %c0_11 = arith.constant 0 : index
      %c0_12 = arith.constant 0 : index
      %15 = vector.load %arg7[%c0_11, %c0_12] : memref<32x128xf32, #tpu.memory_space<vmem>>, vector<32x128xf32>
      tpu.vector_store %arg7[%c0_11, %c0_12], %14 {strides = array<i32>} : memref<32x128xf32, #tpu.memory_space<vmem>>, vector<32x128xf32>,
    } else {
    }
    %c0 = arith.constant 0 : index
    %c0_1 = arith.constant 0 : index
    %3 = vector.load %arg7[%c0, %c0_1] : memref<32x128xf32, #tpu.memory_space<vmem>>, vector<32x128xf32>
    %c0_2 = arith.constant 0 : index
    %c0_3 = arith.constant 0 : index
    %4 = vector.load %arg3[%c0_2, %c0_3] : memref<32x256xf32, #tpu.memory_space<vmem>>, vector<32x256xf32>
    %5 = arith.truncf %4 : vector<32x256xf32> to vector<32x256xbf16>
    %c0_4 = arith.constant 0 : index
    %c0_5 = arith.constant 0 : index
    %6 = vector.load %arg4[%c0_4, %c0_5] : memref<256x128xf32, #tpu.memory_space<vmem>>, vector<256x128xf32>
    %7 = arith.truncf %6 : vector<256x128xf32> to vector<256x128xbf16>
    %cst = arith.constant dense<0.000000e+00> : vector<32x128xf32>
    %8 = tpu.matmul %5, %7, %cst {dimension_numbers = #tpu.dot_dimension_numbers<[1], [0], [0], [1], [0, 0, 1, 1], [], []>} : vector<32x256xbf16>, vector<256x128xbf16>, vector<32x128xf32> -> vector<32x128xf32>
    %9 = arith.addf %3, %8 : vector<32x128xf32>
    %c0_6 = arith.constant 0 : index
    %c0_7 = arith.constant 0 : index
    %10 = vector.load %arg7[%c0_6, %c0_7] : memref<32x128xf32, #tpu.memory_space<vmem>>, vector<32x128xf32>
    tpu.vector_store %arg7[%c0_6, %c0_7], %9 {strides = array<i32>} : memref<32x128xf32, #tpu.memory_space<vmem>>, vector<32x128xf32>,
    %c0_i32_8 = arith.constant 0 : i32
    %11 = arith.cmpi eq, %arg2, %c0_i32_8 : i32
    %12 = arith.extui %11 : i1 to i32
    %c0_i32_9 = arith.constant 0 : i32
    %13 = arith.cmpi ne, %12, %c0_i32_9 : i32
    scf.if %13 {
      %c0_10 = arith.constant 0 : index
      %c0_11 = arith.constant 0 : index
      %14 = vector.load %arg7[%c0_10, %c0_11] : memref<32x128xf32, #tpu.memory_space<vmem>>, vector<32x128xf32>
      %c0_12 = arith.constant 0 : index
      %c0_13 = arith.constant 0 : index
      %15 = vector.load %arg5[%c0_12, %c0_13] : memref<1x128xf32, #tpu.memory_space<vmem>>, vector<1x128xf32>
      %16 = vector.broadcast %15 : vector<1x128xf32> to vector<32x128xf32>
      %17 = arith.addf %14, %16 : vector<32x128xf32>
      %c0_14 = arith.constant 0 : index
      %c0_15 = arith.constant 0 : index
      %18 = vector.load %arg6[%c0_14, %c0_15] : memref<32x128xf32, #tpu.memory_space<vmem>>, vector<32x128xf32>
      tpu.vector_store %arg6[%c0_14, %c0_15], %17 {strides = array<i32>} : memref<32x128xf32, #tpu.memory_space<vmem>>, vector<32x128xf32>,
    } else {
    }
    return
  }
  func.func @transform_0(%arg0: i32, %arg1: i32, %arg2: i32) -> (i32, i32) {
    %c0_i32 = arith.constant 0 : i32
    return %arg0, %arg2 : i32, i32
  }
  func.func @transform_1(%arg0: i32, %arg1: i32, %arg2: i32) -> (i32, i32) {
    %c0_i32 = arith.constant 0 : i32
    return %arg2, %arg1 : i32, i32
  }
  func.func @transform_2(%arg0: i32, %arg1: i32, %arg2: i32) -> (i32, i32) {
    %c0_i32 = arith.constant 0 : i32
    %c0_i32_0 = arith.constant 0 : i32
    return %c0_i32, %arg1 : i32, i32
  }
  func.func @transform_3(%arg0: i32, %arg1: i32, %arg2: i32) -> (i32, i32) {
    %c0_i32 = arith.constant 0 : i32
    return %arg0, %arg1 : i32, i32
  }
}

module attributes {stable_mosaic.version = 11 : i64} {
  func.func @_ln_matmul_kernel(%arg0: i32, %arg1: i32, %arg2: memref<32x128xf32, #tpu.memory_space<vmem>>, %arg3: memref<1x128xf32, #tpu.memory_space<vmem>>, %arg4: memref<1x128xf32, #tpu.memory_space<vmem>>, %arg5: memref<128x384xf32, #tpu.memory_space<vmem>>, %arg6: memref<1x384xf32, #tpu.memory_space<vmem>>, %arg7: memref<32x384xbf16, #tpu.memory_space<vmem>>, %arg8: memref<32x128xbf16, #tpu.memory_space<vmem>>) attributes {dimension_semantics = [#tpu.dimension_semantics<parallel>, #tpu.dimension_semantics<arbitrary>], iteration_bounds = array<i64: 1, 1>, scalar_prefetch = 0 : i64, scratch_operands = 1 : i64, tpu.core_type = #tpu.core_type<tc>, window_params = [{transform_indices = @transform_0, window_bounds = array<i64: 32, 128>}, {pipeline_mode = #tpu.pipeline_mode<synchronous>, transform_indices = @transform_1, window_bounds = array<i64: 1, 128>}, {pipeline_mode = #tpu.pipeline_mode<synchronous>, transform_indices = @transform_2, window_bounds = array<i64: 1, 128>}, {transform_indices = @transform_3, window_bounds = array<i64: 128, 384>}, {transform_indices = @transform_4, window_bounds = array<i64: 1, 384>}, {transform_indices = @transform_5, window_bounds = array<i64: 32, 384>}]} {
    %c0_i32 = arith.constant 0 : i32
    %0 = arith.cmpi eq, %arg1, %c0_i32 : i32
    %1 = arith.extui %0 : i1 to i32
    %c0_i32_0 = arith.constant 0 : i32
    %2 = arith.cmpi ne, %1, %c0_i32_0 : i32
    scf.if %2 {
      %c0_8 = arith.constant 0 : index
      %c0_9 = arith.constant 0 : index
      %12 = vector.load %arg2[%c0_8, %c0_9] : memref<32x128xf32, #tpu.memory_space<vmem>>, vector<32x128xf32>
      %cst_10 = arith.constant dense<0.000000e+00> : vector<32xf32>
      %13 = vector.multi_reduction <add>, %12, %cst_10 [1] : vector<32x128xf32> to vector<32xf32>
      %14 = vector.shape_cast %13 : vector<32xf32> to vector<32x1xf32>
      %cst_11 = arith.constant 1.280000e+02 : f32
      %15 = vector.broadcast %cst_11 : f32 to vector<32x1xf32>
      %16 = arith.divf %14, %15 : vector<32x1xf32>
      %17 = vector.broadcast %16 : vector<32x1xf32> to vector<32x128xf32>
      %18 = arith.subf %12, %17 : vector<32x128xf32>
      %19 = arith.mulf %18, %18 : vector<32x128xf32>
      %cst_12 = arith.constant dense<0.000000e+00> : vector<32xf32>
      %20 = vector.multi_reduction <add>, %19, %cst_12 [1] : vector<32x128xf32> to vector<32xf32>
      %21 = vector.shape_cast %20 : vector<32xf32> to vector<32x1xf32>
      %cst_13 = arith.constant 1.280000e+02 : f32
      %22 = vector.broadcast %cst_13 : f32 to vector<32x1xf32>
      %23 = arith.divf %21, %22 : vector<32x1xf32>
      %24 = vector.broadcast %16 : vector<32x1xf32> to vector<32x128xf32>
      %25 = arith.subf %12, %24 : vector<32x128xf32>
      %cst_14 = arith.constant 9.99999974E-6 : f32
      %26 = vector.broadcast %cst_14 : f32 to vector<32x1xf32>
      %27 = arith.addf %23, %26 : vector<32x1xf32>
      %28 = math.rsqrt %27 : vector<32x1xf32>
      %29 = vector.broadcast %28 : vector<32x1xf32> to vector<32x128xf32>
      %30 = arith.mulf %25, %29 : vector<32x128xf32>
      %c0_15 = arith.constant 0 : index
      %c0_16 = arith.constant 0 : index
      %31 = vector.load %arg3[%c0_15, %c0_16] : memref<1x128xf32, #tpu.memory_space<vmem>>, vector<1x128xf32>
      %32 = vector.broadcast %31 : vector<1x128xf32> to vector<32x128xf32>
      %33 = arith.mulf %30, %32 : vector<32x128xf32>
      %c0_17 = arith.constant 0 : index
      %c0_18 = arith.constant 0 : index
      %34 = vector.load %arg4[%c0_17, %c0_18] : memref<1x128xf32, #tpu.memory_space<vmem>>, vector<1x128xf32>
      %35 = vector.broadcast %34 : vector<1x128xf32> to vector<32x128xf32>
      %36 = arith.addf %33, %35 : vector<32x128xf32>
      %37 = arith.truncf %36 : vector<32x128xf32> to vector<32x128xbf16>
      %c0_19 = arith.constant 0 : index
      %c0_20 = arith.constant 0 : index
      %38 = vector.load %arg8[%c0_19, %c0_20] : memref<32x128xbf16, #tpu.memory_space<vmem>>, vector<32x128xbf16>
      tpu.vector_store %arg8[%c0_19, %c0_20], %37 {strides = array<i32>} : memref<32x128xbf16, #tpu.memory_space<vmem>>, vector<32x128xbf16>,
    } else {
    }
    %c0 = arith.constant 0 : index
    %c0_1 = arith.constant 0 : index
    %3 = vector.load %arg8[%c0, %c0_1] : memref<32x128xbf16, #tpu.memory_space<vmem>>, vector<32x128xbf16>
    %c0_2 = arith.constant 0 : index
    %c0_3 = arith.constant 0 : index
    %4 = vector.load %arg5[%c0_2, %c0_3] : memref<128x384xf32, #tpu.memory_space<vmem>>, vector<128x384xf32>
    %5 = arith.truncf %4 : vector<128x384xf32> to vector<128x384xbf16>
    %cst = arith.constant dense<0.000000e+00> : vector<32x384xf32>
    %6 = tpu.matmul %3, %5, %cst {dimension_numbers = #tpu.dot_dimension_numbers<[1], [0], [0], [1], [0, 0, 1, 1], [], []>} : vector<32x128xbf16>, vector<128x384xbf16>, vector<32x384xf32> -> vector<32x384xf32>
    %c0_4 = arith.constant 0 : index
    %c0_5 = arith.constant 0 : index
    %7 = vector.load %arg6[%c0_4, %c0_5] : memref<1x384xf32, #tpu.memory_space<vmem>>, vector<1x384xf32>
    %8 = vector.broadcast %7 : vector<1x384xf32> to vector<32x384xf32>
    %9 = arith.addf %6, %8 : vector<32x384xf32>
    %10 = arith.truncf %9 : vector<32x384xf32> to vector<32x384xbf16>
    %c0_6 = arith.constant 0 : index
    %c0_7 = arith.constant 0 : index
    %11 = vector.load %arg7[%c0_6, %c0_7] : memref<32x384xbf16, #tpu.memory_space<vmem>>, vector<32x384xbf16>
    tpu.vector_store %arg7[%c0_6, %c0_7], %10 {strides = array<i32>} : memref<32x384xbf16, #tpu.memory_space<vmem>>, vector<32x384xbf16>,
    return
  }
  func.func @transform_0(%arg0: i32, %arg1: i32) -> (i32, i32) {
    %c0_i32 = arith.constant 0 : i32
    %c0_i32_0 = arith.constant 0 : i32
    return %arg0, %c0_i32 : i32, i32
  }
  func.func @transform_1(%arg0: i32, %arg1: i32) -> (i32, i32) {
    %c0_i32 = arith.constant 0 : i32
    %c0_i32_0 = arith.constant 0 : i32
    %c0_i32_1 = arith.constant 0 : i32
    return %c0_i32, %c0_i32_0 : i32, i32
  }
  func.func @transform_2(%arg0: i32, %arg1: i32) -> (i32, i32) {
    %c0_i32 = arith.constant 0 : i32
    %c0_i32_0 = arith.constant 0 : i32
    %c0_i32_1 = arith.constant 0 : i32
    return %c0_i32, %c0_i32_0 : i32, i32
  }
  func.func @transform_3(%arg0: i32, %arg1: i32) -> (i32, i32) {
    %c0_i32 = arith.constant 0 : i32
    %c0_i32_0 = arith.constant 0 : i32
    return %c0_i32, %arg1 : i32, i32
  }
  func.func @transform_4(%arg0: i32, %arg1: i32) -> (i32, i32) {
    %c0_i32 = arith.constant 0 : i32
    %c0_i32_0 = arith.constant 0 : i32
    return %c0_i32, %arg1 : i32, i32
  }
  func.func @transform_5(%arg0: i32, %arg1: i32) -> (i32, i32) {
    %c0_i32 = arith.constant 0 : i32
    return %arg0, %arg1 : i32, i32
  }
}

module attributes {stable_mosaic.version = 11 : i64} {
  func.func @_mha_kernel(%arg0: i32, %arg1: memref<1x16x384xbf16, #tpu.memory_space<vmem>>, %arg2: memref<1x16x128xbf16, #tpu.memory_space<vmem>>) attributes {dimension_semantics = [#tpu.dimension_semantics<parallel>], iteration_bounds = array<i64: 2>, scalar_prefetch = 0 : i64, scratch_operands = 0 : i64, tpu.core_type = #tpu.core_type<tc>, window_params = [{transform_indices = @transform_0, window_bounds = array<i64: 1, 16, 384>}, {transform_indices = @transform_1, window_bounds = array<i64: 1, 16, 128>}]} {
    %c0 = arith.constant 0 : index
    %c0_0 = arith.constant 0 : index
    %c0_1 = arith.constant 0 : index
    %0 = vector.load %arg1[%c0, %c0_0, %c0_1] : memref<1x16x384xbf16, #tpu.memory_space<vmem>>, vector<1x16x384xbf16>
    %1 = vector.shape_cast %0 : vector<1x16x384xbf16> to vector<16x384xbf16>
    %2 = vector.extract_strided_slice %1 {offsets = [0, 0], sizes = [16, 32], strides = [1, 1]} : vector<16x384xbf16> to vector<16x32xbf16>
    %cst = arith.constant 1.767580e-01 : bf16
    %3 = vector.broadcast %cst : bf16 to vector<16x32xbf16>
    %4 = arith.mulf %2, %3 : vector<16x32xbf16>
    %5 = vector.extract_strided_slice %1 {offsets = [0, 128], sizes = [16, 32], strides = [1, 1]} : vector<16x384xbf16> to vector<16x32xbf16>
    %6 = vector.extract_strided_slice %1 {offsets = [0, 256], sizes = [16, 32], strides = [1, 1]} : vector<16x384xbf16> to vector<16x32xbf16>
    %cst_2 = arith.constant dense<0.000000e+00> : vector<16x16xf32>
    %7 = tpu.matmul %4, %5, %cst_2 {dimension_numbers = #tpu.dot_dimension_numbers<[1], [1], [0], [0], [0, 0, 1, 0], [], []>} : vector<16x32xbf16>, vector<16x32xbf16>, vector<16x16xf32> -> vector<16x16xf32>
    %cst_3 = arith.constant dense<0xFF800000> : vector<16xf32>
    %8 = vector.multi_reduction <maximumf>, %7, %cst_3 [1] : vector<16x16xf32> to vector<16xf32>
    %9 = vector.shape_cast %8 : vector<16xf32> to vector<16x1xf32>
    %10 = vector.broadcast %9 : vector<16x1xf32> to vector<16x16xf32>
    %11 = arith.subf %7, %10 : vector<16x16xf32>
    %12 = math.exp %11 : vector<16x16xf32>
    %cst_4 = arith.constant dense<0.000000e+00> : vector<16xf32>
    %13 = vector.multi_reduction <add>, %12, %cst_4 [1] : vector<16x16xf32> to vector<16xf32>
    %14 = vector.shape_cast %13 : vector<16xf32> to vector<16x1xf32>
    %15 = arith.truncf %12 : vector<16x16xf32> to vector<16x16xbf16>
    %cst_5 = arith.constant dense<0.000000e+00> : vector<16x32xf32>
    %16 = tpu.matmul %15, %6, %cst_5 {dimension_numbers = #tpu.dot_dimension_numbers<[1], [0], [0], [1], [0, 0, 1, 1], [], []>} : vector<16x16xbf16>, vector<16x32xbf16>, vector<16x32xf32> -> vector<16x32xf32>
    %17 = tpu.reciprocal %14 {approx = true} : vector<16x1xf32> -> vector<16x1xf32>
    %18 = vector.broadcast %17 : vector<16x1xf32> to vector<16x32xf32>
    %19 = arith.mulf %16, %18 : vector<16x32xf32>
    %20 = arith.truncf %19 : vector<16x32xf32> to vector<16x32xbf16>
    %c0_6 = arith.constant 0 : index
    %c0_7 = arith.constant 0 : index
    %c0_8 = arith.constant 0 : index
    %21 = vector.load %arg2[%c0_6, %c0_7, %c0_8] : memref<1x16x128xbf16, #tpu.memory_space<vmem>>, vector<1x16x32xbf16>
    %22 = vector.shape_cast %21 : vector<1x16x32xbf16> to vector<16x32xbf16>
    %23 = vector.shape_cast %20 : vector<16x32xbf16> to vector<1x16x32xbf16>
    tpu.vector_store %arg2[%c0_6, %c0_7, %c0_8], %23 {strides = array<i32>} : memref<1x16x128xbf16, #tpu.memory_space<vmem>>, vector<1x16x32xbf16>,
    %24 = vector.extract_strided_slice %1 {offsets = [0, 32], sizes = [16, 32], strides = [1, 1]} : vector<16x384xbf16> to vector<16x32xbf16>
    %cst_9 = arith.constant 1.767580e-01 : bf16
    %25 = vector.broadcast %cst_9 : bf16 to vector<16x32xbf16>
    %26 = arith.mulf %24, %25 : vector<16x32xbf16>
    %27 = vector.extract_strided_slice %1 {offsets = [0, 160], sizes = [16, 32], strides = [1, 1]} : vector<16x384xbf16> to vector<16x32xbf16>
    %28 = vector.extract_strided_slice %1 {offsets = [0, 288], sizes = [16, 32], strides = [1, 1]} : vector<16x384xbf16> to vector<16x32xbf16>
    %cst_10 = arith.constant dense<0.000000e+00> : vector<16x16xf32>
    %29 = tpu.matmul %26, %27, %cst_10 {dimension_numbers = #tpu.dot_dimension_numbers<[1], [1], [0], [0], [0, 0, 1, 0], [], []>} : vector<16x32xbf16>, vector<16x32xbf16>, vector<16x16xf32> -> vector<16x16xf32>
    %cst_11 = arith.constant dense<0xFF800000> : vector<16xf32>
    %30 = vector.multi_reduction <maximumf>, %29, %cst_11 [1] : vector<16x16xf32> to vector<16xf32>
    %31 = vector.shape_cast %30 : vector<16xf32> to vector<16x1xf32>
    %32 = vector.broadcast %31 : vector<16x1xf32> to vector<16x16xf32>
    %33 = arith.subf %29, %32 : vector<16x16xf32>
    %34 = math.exp %33 : vector<16x16xf32>
    %cst_12 = arith.constant dense<0.000000e+00> : vector<16xf32>
    %35 = vector.multi_reduction <add>, %34, %cst_12 [1] : vector<16x16xf32> to vector<16xf32>
    %36 = vector.shape_cast %35 : vector<16xf32> to vector<16x1xf32>
    %37 = arith.truncf %34 : vector<16x16xf32> to vector<16x16xbf16>
    %cst_13 = arith.constant dense<0.000000e+00> : vector<16x32xf32>
    %38 = tpu.matmul %37, %28, %cst_13 {dimension_numbers = #tpu.dot_dimension_numbers<[1], [0], [0], [1], [0, 0, 1, 1], [], []>} : vector<16x16xbf16>, vector<16x32xbf16>, vector<16x32xf32> -> vector<16x32xf32>
    %39 = tpu.reciprocal %36 {approx = true} : vector<16x1xf32> -> vector<16x1xf32>
    %40 = vector.broadcast %39 : vector<16x1xf32> to vector<16x32xf32>
    %41 = arith.mulf %38, %40 : vector<16x32xf32>
    %42 = arith.truncf %41 : vector<16x32xf32> to vector<16x32xbf16>
    %c0_14 = arith.constant 0 : index
    %c0_15 = arith.constant 0 : index
    %c32 = arith.constant 32 : index
    %43 = vector.load %arg2[%c0_14, %c0_15, %c32] : memref<1x16x128xbf16, #tpu.memory_space<vmem>>, vector<1x16x32xbf16>
    %44 = vector.shape_cast %43 : vector<1x16x32xbf16> to vector<16x32xbf16>
    %45 = vector.shape_cast %42 : vector<16x32xbf16> to vector<1x16x32xbf16>
    tpu.vector_store %arg2[%c0_14, %c0_15, %c32], %45 {strides = array<i32>} : memref<1x16x128xbf16, #tpu.memory_space<vmem>>, vector<1x16x32xbf16>,
    %46 = vector.extract_strided_slice %1 {offsets = [0, 64], sizes = [16, 32], strides = [1, 1]} : vector<16x384xbf16> to vector<16x32xbf16>
    %cst_16 = arith.constant 1.767580e-01 : bf16
    %47 = vector.broadcast %cst_16 : bf16 to vector<16x32xbf16>
    %48 = arith.mulf %46, %47 : vector<16x32xbf16>
    %49 = vector.extract_strided_slice %1 {offsets = [0, 192], sizes = [16, 32], strides = [1, 1]} : vector<16x384xbf16> to vector<16x32xbf16>
    %50 = vector.extract_strided_slice %1 {offsets = [0, 320], sizes = [16, 32], strides = [1, 1]} : vector<16x384xbf16> to vector<16x32xbf16>
    %cst_17 = arith.constant dense<0.000000e+00> : vector<16x16xf32>
    %51 = tpu.matmul %48, %49, %cst_17 {dimension_numbers = #tpu.dot_dimension_numbers<[1], [1], [0], [0], [0, 0, 1, 0], [], []>} : vector<16x32xbf16>, vector<16x32xbf16>, vector<16x16xf32> -> vector<16x16xf32>
    %cst_18 = arith.constant dense<0xFF800000> : vector<16xf32>
    %52 = vector.multi_reduction <maximumf>, %51, %cst_18 [1] : vector<16x16xf32> to vector<16xf32>
    %53 = vector.shape_cast %52 : vector<16xf32> to vector<16x1xf32>
    %54 = vector.broadcast %53 : vector<16x1xf32> to vector<16x16xf32>
    %55 = arith.subf %51, %54 : vector<16x16xf32>
    %56 = math.exp %55 : vector<16x16xf32>
    %cst_19 = arith.constant dense<0.000000e+00> : vector<16xf32>
    %57 = vector.multi_reduction <add>, %56, %cst_19 [1] : vector<16x16xf32> to vector<16xf32>
    %58 = vector.shape_cast %57 : vector<16xf32> to vector<16x1xf32>
    %59 = arith.truncf %56 : vector<16x16xf32> to vector<16x16xbf16>
    %cst_20 = arith.constant dense<0.000000e+00> : vector<16x32xf32>
    %60 = tpu.matmul %59, %50, %cst_20 {dimension_numbers = #tpu.dot_dimension_numbers<[1], [0], [0], [1], [0, 0, 1, 1], [], []>} : vector<16x16xbf16>, vector<16x32xbf16>, vector<16x32xf32> -> vector<16x32xf32>
    %61 = tpu.reciprocal %58 {approx = true} : vector<16x1xf32> -> vector<16x1xf32>
    %62 = vector.broadcast %61 : vector<16x1xf32> to vector<16x32xf32>
    %63 = arith.mulf %60, %62 : vector<16x32xf32>
    %64 = arith.truncf %63 : vector<16x32xf32> to vector<16x32xbf16>
    %c0_21 = arith.constant 0 : index
    %c0_22 = arith.constant 0 : index
    %c64 = arith.constant 64 : index
    %65 = vector.load %arg2[%c0_21, %c0_22, %c64] : memref<1x16x128xbf16, #tpu.memory_space<vmem>>, vector<1x16x32xbf16>
    %66 = vector.shape_cast %65 : vector<1x16x32xbf16> to vector<16x32xbf16>
    %67 = vector.shape_cast %64 : vector<16x32xbf16> to vector<1x16x32xbf16>
    tpu.vector_store %arg2[%c0_21, %c0_22, %c64], %67 {strides = array<i32>} : memref<1x16x128xbf16, #tpu.memory_space<vmem>>, vector<1x16x32xbf16>,
    %68 = vector.extract_strided_slice %1 {offsets = [0, 96], sizes = [16, 32], strides = [1, 1]} : vector<16x384xbf16> to vector<16x32xbf16>
    %cst_23 = arith.constant 1.767580e-01 : bf16
    %69 = vector.broadcast %cst_23 : bf16 to vector<16x32xbf16>
    %70 = arith.mulf %68, %69 : vector<16x32xbf16>
    %71 = vector.extract_strided_slice %1 {offsets = [0, 224], sizes = [16, 32], strides = [1, 1]} : vector<16x384xbf16> to vector<16x32xbf16>
    %72 = vector.extract_strided_slice %1 {offsets = [0, 352], sizes = [16, 32], strides = [1, 1]} : vector<16x384xbf16> to vector<16x32xbf16>
    %cst_24 = arith.constant dense<0.000000e+00> : vector<16x16xf32>
    %73 = tpu.matmul %70, %71, %cst_24 {dimension_numbers = #tpu.dot_dimension_numbers<[1], [1], [0], [0], [0, 0, 1, 0], [], []>} : vector<16x32xbf16>, vector<16x32xbf16>, vector<16x16xf32> -> vector<16x16xf32>
    %cst_25 = arith.constant dense<0xFF800000> : vector<16xf32>
    %74 = vector.multi_reduction <maximumf>, %73, %cst_25 [1] : vector<16x16xf32> to vector<16xf32>
    %75 = vector.shape_cast %74 : vector<16xf32> to vector<16x1xf32>
    %76 = vector.broadcast %75 : vector<16x1xf32> to vector<16x16xf32>
    %77 = arith.subf %73, %76 : vector<16x16xf32>
    %78 = math.exp %77 : vector<16x16xf32>
    %cst_26 = arith.constant dense<0.000000e+00> : vector<16xf32>
    %79 = vector.multi_reduction <add>, %78, %cst_26 [1] : vector<16x16xf32> to vector<16xf32>
    %80 = vector.shape_cast %79 : vector<16xf32> to vector<16x1xf32>
    %81 = arith.truncf %78 : vector<16x16xf32> to vector<16x16xbf16>
    %cst_27 = arith.constant dense<0.000000e+00> : vector<16x32xf32>
    %82 = tpu.matmul %81, %72, %cst_27 {dimension_numbers = #tpu.dot_dimension_numbers<[1], [0], [0], [1], [0, 0, 1, 1], [], []>} : vector<16x16xbf16>, vector<16x32xbf16>, vector<16x32xf32> -> vector<16x32xf32>
    %83 = tpu.reciprocal %80 {approx = true} : vector<16x1xf32> -> vector<16x1xf32>
    %84 = vector.broadcast %83 : vector<16x1xf32> to vector<16x32xf32>
    %85 = arith.mulf %82, %84 : vector<16x32xf32>
    %86 = arith.truncf %85 : vector<16x32xf32> to vector<16x32xbf16>
    %c0_28 = arith.constant 0 : index
    %c0_29 = arith.constant 0 : index
    %c96 = arith.constant 96 : index
    %87 = vector.load %arg2[%c0_28, %c0_29, %c96] : memref<1x16x128xbf16, #tpu.memory_space<vmem>>, vector<1x16x32xbf16>
    %88 = vector.shape_cast %87 : vector<1x16x32xbf16> to vector<16x32xbf16>
    %89 = vector.shape_cast %86 : vector<16x32xbf16> to vector<1x16x32xbf16>
    tpu.vector_store %arg2[%c0_28, %c0_29, %c96], %89 {strides = array<i32>} : memref<1x16x128xbf16, #tpu.memory_space<vmem>>, vector<1x16x32xbf16>,
    return
  }
  func.func @transform_0(%arg0: i32) -> (i32, i32, i32) {
    %c0_i32 = arith.constant 0 : i32
    %c0_i32_0 = arith.constant 0 : i32
    %c0_i32_1 = arith.constant 0 : i32
    return %arg0, %c0_i32, %c0_i32_0 : i32, i32, i32
  }
  func.func @transform_1(%arg0: i32) -> (i32, i32, i32) {
    %c0_i32 = arith.constant 0 : i32
    %c0_i32_0 = arith.constant 0 : i32
    %c0_i32_1 = arith.constant 0 : i32
    return %arg0, %c0_i32, %c0_i32_0 : i32, i32, i32
  }
}

module attributes {stable_mosaic.version = 11 : i64} {
  func.func @_matmul_bias_kernel(%arg0: i32, %arg1: i32, %arg2: i32, %arg3: memref<32x256xbf16, #tpu.memory_space<vmem>>, %arg4: memref<256x128xf32, #tpu.memory_space<vmem>>, %arg5: memref<1x128xf32, #tpu.memory_space<vmem>>, %arg6: memref<32x128xf32, #tpu.memory_space<vmem>>, %arg7: memref<32x128xf32, #tpu.memory_space<vmem>>, %arg8: memref<32x128xf32, #tpu.memory_space<vmem>>) attributes {dimension_semantics = [#tpu.dimension_semantics<parallel>, #tpu.dimension_semantics<parallel>, #tpu.dimension_semantics<arbitrary>], iteration_bounds = array<i64: 1, 1, 1>, scalar_prefetch = 0 : i64, scratch_operands = 1 : i64, tpu.core_type = #tpu.core_type<tc>, window_params = [{transform_indices = @transform_0, window_bounds = array<i64: 32, 256>}, {transform_indices = @transform_1, window_bounds = array<i64: 256, 128>}, {transform_indices = @transform_2, window_bounds = array<i64: 1, 128>}, {transform_indices = @transform_3, window_bounds = array<i64: 32, 128>}, {transform_indices = @transform_4, window_bounds = array<i64: 32, 128>}]} {
    %c0_i32 = arith.constant 0 : i32
    %0 = arith.cmpi eq, %arg2, %c0_i32 : i32
    %1 = arith.extui %0 : i1 to i32
    %c0_i32_0 = arith.constant 0 : i32
    %2 = arith.cmpi ne, %1, %c0_i32_0 : i32
    scf.if %2 {
      %cst_10 = arith.constant 0.000000e+00 : f32
      %13 = vector.broadcast %cst_10 : f32 to vector<32x128xf32>
      %c0_11 = arith.constant 0 : index
      %c0_12 = arith.constant 0 : index
      %14 = vector.load %arg8[%c0_11, %c0_12] : memref<32x128xf32, #tpu.memory_space<vmem>>, vector<32x128xf32>
      tpu.vector_store %arg8[%c0_11, %c0_12], %13 {strides = array<i32>} : memref<32x128xf32, #tpu.memory_space<vmem>>, vector<32x128xf32>,
    } else {
    }
    %c0 = arith.constant 0 : index
    %c0_1 = arith.constant 0 : index
    %3 = vector.load %arg8[%c0, %c0_1] : memref<32x128xf32, #tpu.memory_space<vmem>>, vector<32x128xf32>
    %c0_2 = arith.constant 0 : index
    %c0_3 = arith.constant 0 : index
    %4 = vector.load %arg3[%c0_2, %c0_3] : memref<32x256xbf16, #tpu.memory_space<vmem>>, vector<32x256xbf16>
    %c0_4 = arith.constant 0 : index
    %c0_5 = arith.constant 0 : index
    %5 = vector.load %arg4[%c0_4, %c0_5] : memref<256x128xf32, #tpu.memory_space<vmem>>, vector<256x128xf32>
    %6 = arith.truncf %5 : vector<256x128xf32> to vector<256x128xbf16>
    %cst = arith.constant dense<0.000000e+00> : vector<32x128xf32>
    %7 = tpu.matmul %4, %6, %cst {dimension_numbers = #tpu.dot_dimension_numbers<[1], [0], [0], [1], [0, 0, 1, 1], [], []>} : vector<32x256xbf16>, vector<256x128xbf16>, vector<32x128xf32> -> vector<32x128xf32>
    %8 = arith.addf %3, %7 : vector<32x128xf32>
    %c0_6 = arith.constant 0 : index
    %c0_7 = arith.constant 0 : index
    %9 = vector.load %arg8[%c0_6, %c0_7] : memref<32x128xf32, #tpu.memory_space<vmem>>, vector<32x128xf32>
    tpu.vector_store %arg8[%c0_6, %c0_7], %8 {strides = array<i32>} : memref<32x128xf32, #tpu.memory_space<vmem>>, vector<32x128xf32>,
    %c0_i32_8 = arith.constant 0 : i32
    %10 = arith.cmpi eq, %arg2, %c0_i32_8 : i32
    %11 = arith.extui %10 : i1 to i32
    %c0_i32_9 = arith.constant 0 : i32
    %12 = arith.cmpi ne, %11, %c0_i32_9 : i32
    scf.if %12 {
      %c0_10 = arith.constant 0 : index
      %c0_11 = arith.constant 0 : index
      %13 = vector.load %arg8[%c0_10, %c0_11] : memref<32x128xf32, #tpu.memory_space<vmem>>, vector<32x128xf32>
      %c0_12 = arith.constant 0 : index
      %c0_13 = arith.constant 0 : index
      %14 = vector.load %arg5[%c0_12, %c0_13] : memref<1x128xf32, #tpu.memory_space<vmem>>, vector<1x128xf32>
      %15 = vector.broadcast %14 : vector<1x128xf32> to vector<32x128xf32>
      %16 = arith.addf %13, %15 : vector<32x128xf32>
      %c0_14 = arith.constant 0 : index
      %c0_15 = arith.constant 0 : index
      %17 = vector.load %arg6[%c0_14, %c0_15] : memref<32x128xf32, #tpu.memory_space<vmem>>, vector<32x128xf32>
      %18 = arith.addf %16, %17 : vector<32x128xf32>
      %c0_16 = arith.constant 0 : index
      %c0_17 = arith.constant 0 : index
      %19 = vector.load %arg7[%c0_16, %c0_17] : memref<32x128xf32, #tpu.memory_space<vmem>>, vector<32x128xf32>
      tpu.vector_store %arg7[%c0_16, %c0_17], %18 {strides = array<i32>} : memref<32x128xf32, #tpu.memory_space<vmem>>, vector<32x128xf32>,
    } else {
    }
    return
  }
  func.func @transform_0(%arg0: i32, %arg1: i32, %arg2: i32) -> (i32, i32) {
    %c0_i32 = arith.constant 0 : i32
    return %arg0, %arg2 : i32, i32
  }
  func.func @transform_1(%arg0: i32, %arg1: i32, %arg2: i32) -> (i32, i32) {
    %c0_i32 = arith.constant 0 : i32
    return %arg2, %arg1 : i32, i32
  }
  func.func @transform_2(%arg0: i32, %arg1: i32, %arg2: i32) -> (i32, i32) {
    %c0_i32 = arith.constant 0 : i32
    %c0_i32_0 = arith.constant 0 : i32
    return %c0_i32, %arg1 : i32, i32
  }
  func.func @transform_3(%arg0: i32, %arg1: i32, %arg2: i32) -> (i32, i32) {
    %c0_i32 = arith.constant 0 : i32
    return %arg0, %arg1 : i32, i32
  }
  func.func @transform_4(%arg0: i32, %arg1: i32, %arg2: i32) -> (i32, i32) {
    %c0_i32 = arith.constant 0 : i32
    return %arg0, %arg1 : i32, i32
  }
}

module attributes {stable_mosaic.version = 11 : i64} {
  func.func @_ln_matmul_kernel(%arg0: i32, %arg1: i32, %arg2: memref<32x128xf32, #tpu.memory_space<vmem>>, %arg3: memref<1x128xf32, #tpu.memory_space<vmem>>, %arg4: memref<1x128xf32, #tpu.memory_space<vmem>>, %arg5: memref<128x256xf32, #tpu.memory_space<vmem>>, %arg6: memref<1x256xf32, #tpu.memory_space<vmem>>, %arg7: memref<32x256xbf16, #tpu.memory_space<vmem>>, %arg8: memref<32x128xbf16, #tpu.memory_space<vmem>>) attributes {dimension_semantics = [#tpu.dimension_semantics<parallel>, #tpu.dimension_semantics<arbitrary>], iteration_bounds = array<i64: 1, 1>, scalar_prefetch = 0 : i64, scratch_operands = 1 : i64, tpu.core_type = #tpu.core_type<tc>, window_params = [{transform_indices = @transform_0, window_bounds = array<i64: 32, 128>}, {pipeline_mode = #tpu.pipeline_mode<synchronous>, transform_indices = @transform_1, window_bounds = array<i64: 1, 128>}, {pipeline_mode = #tpu.pipeline_mode<synchronous>, transform_indices = @transform_2, window_bounds = array<i64: 1, 128>}, {transform_indices = @transform_3, window_bounds = array<i64: 128, 256>}, {transform_indices = @transform_4, window_bounds = array<i64: 1, 256>}, {transform_indices = @transform_5, window_bounds = array<i64: 32, 256>}]} {
    %c0_i32 = arith.constant 0 : i32
    %0 = arith.cmpi eq, %arg1, %c0_i32 : i32
    %1 = arith.extui %0 : i1 to i32
    %c0_i32_0 = arith.constant 0 : i32
    %2 = arith.cmpi ne, %1, %c0_i32_0 : i32
    scf.if %2 {
      %c0_9 = arith.constant 0 : index
      %c0_10 = arith.constant 0 : index
      %14 = vector.load %arg2[%c0_9, %c0_10] : memref<32x128xf32, #tpu.memory_space<vmem>>, vector<32x128xf32>
      %cst_11 = arith.constant dense<0.000000e+00> : vector<32xf32>
      %15 = vector.multi_reduction <add>, %14, %cst_11 [1] : vector<32x128xf32> to vector<32xf32>
      %16 = vector.shape_cast %15 : vector<32xf32> to vector<32x1xf32>
      %cst_12 = arith.constant 1.280000e+02 : f32
      %17 = vector.broadcast %cst_12 : f32 to vector<32x1xf32>
      %18 = arith.divf %16, %17 : vector<32x1xf32>
      %19 = vector.broadcast %18 : vector<32x1xf32> to vector<32x128xf32>
      %20 = arith.subf %14, %19 : vector<32x128xf32>
      %21 = arith.mulf %20, %20 : vector<32x128xf32>
      %cst_13 = arith.constant dense<0.000000e+00> : vector<32xf32>
      %22 = vector.multi_reduction <add>, %21, %cst_13 [1] : vector<32x128xf32> to vector<32xf32>
      %23 = vector.shape_cast %22 : vector<32xf32> to vector<32x1xf32>
      %cst_14 = arith.constant 1.280000e+02 : f32
      %24 = vector.broadcast %cst_14 : f32 to vector<32x1xf32>
      %25 = arith.divf %23, %24 : vector<32x1xf32>
      %26 = vector.broadcast %18 : vector<32x1xf32> to vector<32x128xf32>
      %27 = arith.subf %14, %26 : vector<32x128xf32>
      %cst_15 = arith.constant 9.99999974E-6 : f32
      %28 = vector.broadcast %cst_15 : f32 to vector<32x1xf32>
      %29 = arith.addf %25, %28 : vector<32x1xf32>
      %30 = math.rsqrt %29 : vector<32x1xf32>
      %31 = vector.broadcast %30 : vector<32x1xf32> to vector<32x128xf32>
      %32 = arith.mulf %27, %31 : vector<32x128xf32>
      %c0_16 = arith.constant 0 : index
      %c0_17 = arith.constant 0 : index
      %33 = vector.load %arg3[%c0_16, %c0_17] : memref<1x128xf32, #tpu.memory_space<vmem>>, vector<1x128xf32>
      %34 = vector.broadcast %33 : vector<1x128xf32> to vector<32x128xf32>
      %35 = arith.mulf %32, %34 : vector<32x128xf32>
      %c0_18 = arith.constant 0 : index
      %c0_19 = arith.constant 0 : index
      %36 = vector.load %arg4[%c0_18, %c0_19] : memref<1x128xf32, #tpu.memory_space<vmem>>, vector<1x128xf32>
      %37 = vector.broadcast %36 : vector<1x128xf32> to vector<32x128xf32>
      %38 = arith.addf %35, %37 : vector<32x128xf32>
      %39 = arith.truncf %38 : vector<32x128xf32> to vector<32x128xbf16>
      %c0_20 = arith.constant 0 : index
      %c0_21 = arith.constant 0 : index
      %40 = vector.load %arg8[%c0_20, %c0_21] : memref<32x128xbf16, #tpu.memory_space<vmem>>, vector<32x128xbf16>
      tpu.vector_store %arg8[%c0_20, %c0_21], %39 {strides = array<i32>} : memref<32x128xbf16, #tpu.memory_space<vmem>>, vector<32x128xbf16>,
    } else {
    }
    %c0 = arith.constant 0 : index
    %c0_1 = arith.constant 0 : index
    %3 = vector.load %arg8[%c0, %c0_1] : memref<32x128xbf16, #tpu.memory_space<vmem>>, vector<32x128xbf16>
    %c0_2 = arith.constant 0 : index
    %c0_3 = arith.constant 0 : index
    %4 = vector.load %arg5[%c0_2, %c0_3] : memref<128x256xf32, #tpu.memory_space<vmem>>, vector<128x256xf32>
    %5 = arith.truncf %4 : vector<128x256xf32> to vector<128x256xbf16>
    %cst = arith.constant dense<0.000000e+00> : vector<32x256xf32>
    %6 = tpu.matmul %3, %5, %cst {dimension_numbers = #tpu.dot_dimension_numbers<[1], [0], [0], [1], [0, 0, 1, 1], [], []>} : vector<32x128xbf16>, vector<128x256xbf16>, vector<32x256xf32> -> vector<32x256xf32>
    %c0_4 = arith.constant 0 : index
    %c0_5 = arith.constant 0 : index
    %7 = vector.load %arg6[%c0_4, %c0_5] : memref<1x256xf32, #tpu.memory_space<vmem>>, vector<1x256xf32>
    %8 = vector.broadcast %7 : vector<1x256xf32> to vector<32x256xf32>
    %9 = arith.addf %6, %8 : vector<32x256xf32>
    %cst_6 = arith.constant 0.000000e+00 : f32
    %10 = vector.broadcast %cst_6 : f32 to vector<32x256xf32>
    %11 = arith.maximumf %9, %10 : vector<32x256xf32>
    %12 = arith.truncf %11 : vector<32x256xf32> to vector<32x256xbf16>
    %c0_7 = arith.constant 0 : index
    %c0_8 = arith.constant 0 : index
    %13 = vector.load %arg7[%c0_7, %c0_8] : memref<32x256xbf16, #tpu.memory_space<vmem>>, vector<32x256xbf16>
    tpu.vector_store %arg7[%c0_7, %c0_8], %12 {strides = array<i32>} : memref<32x256xbf16, #tpu.memory_space<vmem>>, vector<32x256xbf16>,
    return
  }
  func.func @transform_0(%arg0: i32, %arg1: i32) -> (i32, i32) {
    %c0_i32 = arith.constant 0 : i32
    %c0_i32_0 = arith.constant 0 : i32
    return %arg0, %c0_i32 : i32, i32
  }
  func.func @transform_1(%arg0: i32, %arg1: i32) -> (i32, i32) {
    %c0_i32 = arith.constant 0 : i32
    %c0_i32_0 = arith.constant 0 : i32
    %c0_i32_1 = arith.constant 0 : i32
    return %c0_i32, %c0_i32_0 : i32, i32
  }
  func.func @transform_2(%arg0: i32, %arg1: i32) -> (i32, i32) {
    %c0_i32 = arith.constant 0 : i32
    %c0_i32_0 = arith.constant 0 : i32
    %c0_i32_1 = arith.constant 0 : i32
    return %c0_i32, %c0_i32_0 : i32, i32
  }
  func.func @transform_3(%arg0: i32, %arg1: i32) -> (i32, i32) {
    %c0_i32 = arith.constant 0 : i32
    %c0_i32_0 = arith.constant 0 : i32
    return %c0_i32, %arg1 : i32, i32
  }
  func.func @transform_4(%arg0: i32, %arg1: i32) -> (i32, i32) {
    %c0_i32 = arith.constant 0 : i32
    %c0_i32_0 = arith.constant 0 : i32
    return %c0_i32, %arg1 : i32, i32
  }
  func.func @transform_5(%arg0: i32, %arg1: i32) -> (i32, i32) {
    %c0_i32 = arith.constant 0 : i32
    return %arg0, %arg1 : i32, i32
  }
}

module attributes {stable_mosaic.version = 11 : i64} {
  func.func @_matmul_bias_kernel(%arg0: i32, %arg1: i32, %arg2: i32, %arg3: memref<32x128xbf16, #tpu.memory_space<vmem>>, %arg4: memref<128x128xf32, #tpu.memory_space<vmem>>, %arg5: memref<1x128xf32, #tpu.memory_space<vmem>>, %arg6: memref<32x128xf32, #tpu.memory_space<vmem>>, %arg7: memref<32x128xf32, #tpu.memory_space<vmem>>, %arg8: memref<32x128xf32, #tpu.memory_space<vmem>>) attributes {dimension_semantics = [#tpu.dimension_semantics<parallel>, #tpu.dimension_semantics<parallel>, #tpu.dimension_semantics<arbitrary>], iteration_bounds = array<i64: 1, 1, 1>, scalar_prefetch = 0 : i64, scratch_operands = 1 : i64, tpu.core_type = #tpu.core_type<tc>, window_params = [{transform_indices = @transform_0, window_bounds = array<i64: 32, 128>}, {transform_indices = @transform_1, window_bounds = array<i64: 128, 128>}, {transform_indices = @transform_2, window_bounds = array<i64: 1, 128>}, {transform_indices = @transform_3, window_bounds = array<i64: 32, 128>}, {transform_indices = @transform_4, window_bounds = array<i64: 32, 128>}]} {
    %c0_i32 = arith.constant 0 : i32
    %0 = arith.cmpi eq, %arg2, %c0_i32 : i32
    %1 = arith.extui %0 : i1 to i32
    %c0_i32_0 = arith.constant 0 : i32
    %2 = arith.cmpi ne, %1, %c0_i32_0 : i32
    scf.if %2 {
      %cst_10 = arith.constant 0.000000e+00 : f32
      %13 = vector.broadcast %cst_10 : f32 to vector<32x128xf32>
      %c0_11 = arith.constant 0 : index
      %c0_12 = arith.constant 0 : index
      %14 = vector.load %arg8[%c0_11, %c0_12] : memref<32x128xf32, #tpu.memory_space<vmem>>, vector<32x128xf32>
      tpu.vector_store %arg8[%c0_11, %c0_12], %13 {strides = array<i32>} : memref<32x128xf32, #tpu.memory_space<vmem>>, vector<32x128xf32>,
    } else {
    }
    %c0 = arith.constant 0 : index
    %c0_1 = arith.constant 0 : index
    %3 = vector.load %arg8[%c0, %c0_1] : memref<32x128xf32, #tpu.memory_space<vmem>>, vector<32x128xf32>
    %c0_2 = arith.constant 0 : index
    %c0_3 = arith.constant 0 : index
    %4 = vector.load %arg3[%c0_2, %c0_3] : memref<32x128xbf16, #tpu.memory_space<vmem>>, vector<32x128xbf16>
    %c0_4 = arith.constant 0 : index
    %c0_5 = arith.constant 0 : index
    %5 = vector.load %arg4[%c0_4, %c0_5] : memref<128x128xf32, #tpu.memory_space<vmem>>, vector<128x128xf32>
    %6 = arith.truncf %5 : vector<128x128xf32> to vector<128x128xbf16>
    %cst = arith.constant dense<0.000000e+00> : vector<32x128xf32>
    %7 = tpu.matmul %4, %6, %cst {dimension_numbers = #tpu.dot_dimension_numbers<[1], [0], [0], [1], [0, 0, 1, 1], [], []>} : vector<32x128xbf16>, vector<128x128xbf16>, vector<32x128xf32> -> vector<32x128xf32>
    %8 = arith.addf %3, %7 : vector<32x128xf32>
    %c0_6 = arith.constant 0 : index
    %c0_7 = arith.constant 0 : index
    %9 = vector.load %arg8[%c0_6, %c0_7] : memref<32x128xf32, #tpu.memory_space<vmem>>, vector<32x128xf32>
    tpu.vector_store %arg8[%c0_6, %c0_7], %8 {strides = array<i32>} : memref<32x128xf32, #tpu.memory_space<vmem>>, vector<32x128xf32>,
    %c0_i32_8 = arith.constant 0 : i32
    %10 = arith.cmpi eq, %arg2, %c0_i32_8 : i32
    %11 = arith.extui %10 : i1 to i32
    %c0_i32_9 = arith.constant 0 : i32
    %12 = arith.cmpi ne, %11, %c0_i32_9 : i32
    scf.if %12 {
      %c0_10 = arith.constant 0 : index
      %c0_11 = arith.constant 0 : index
      %13 = vector.load %arg8[%c0_10, %c0_11] : memref<32x128xf32, #tpu.memory_space<vmem>>, vector<32x128xf32>
      %c0_12 = arith.constant 0 : index
      %c0_13 = arith.constant 0 : index
      %14 = vector.load %arg5[%c0_12, %c0_13] : memref<1x128xf32, #tpu.memory_space<vmem>>, vector<1x128xf32>
      %15 = vector.broadcast %14 : vector<1x128xf32> to vector<32x128xf32>
      %16 = arith.addf %13, %15 : vector<32x128xf32>
      %c0_14 = arith.constant 0 : index
      %c0_15 = arith.constant 0 : index
      %17 = vector.load %arg6[%c0_14, %c0_15] : memref<32x128xf32, #tpu.memory_space<vmem>>, vector<32x128xf32>
      %18 = arith.addf %16, %17 : vector<32x128xf32>
      %c0_16 = arith.constant 0 : index
      %c0_17 = arith.constant 0 : index
      %19 = vector.load %arg7[%c0_16, %c0_17] : memref<32x128xf32, #tpu.memory_space<vmem>>, vector<32x128xf32>
      tpu.vector_store %arg7[%c0_16, %c0_17], %18 {strides = array<i32>} : memref<32x128xf32, #tpu.memory_space<vmem>>, vector<32x128xf32>,
    } else {
    }
    return
  }
  func.func @transform_0(%arg0: i32, %arg1: i32, %arg2: i32) -> (i32, i32) {
    %c0_i32 = arith.constant 0 : i32
    return %arg0, %arg2 : i32, i32
  }
  func.func @transform_1(%arg0: i32, %arg1: i32, %arg2: i32) -> (i32, i32) {
    %c0_i32 = arith.constant 0 : i32
    return %arg2, %arg1 : i32, i32
  }
  func.func @transform_2(%arg0: i32, %arg1: i32, %arg2: i32) -> (i32, i32) {
    %c0_i32 = arith.constant 0 : i32
    %c0_i32_0 = arith.constant 0 : i32
    return %c0_i32, %arg1 : i32, i32
  }
  func.func @transform_3(%arg0: i32, %arg1: i32, %arg2: i32) -> (i32, i32) {
    %c0_i32 = arith.constant 0 : i32
    return %arg0, %arg1 : i32, i32
  }
  func.func @transform_4(%arg0: i32, %arg1: i32, %arg2: i32) -> (i32, i32) {
    %c0_i32 = arith.constant 0 : i32
    return %arg0, %arg1 : i32, i32
  }
}

module attributes {stable_mosaic.version = 11 : i64} {
  func.func @_matmul_bias_kernel(%arg0: i32, %arg1: i32, %arg2: i32, %arg3: memref<32x256xbf16, #tpu.memory_space<vmem>>, %arg4: memref<256x128xf32, #tpu.memory_space<vmem>>, %arg5: memref<1x128xf32, #tpu.memory_space<vmem>>, %arg6: memref<32x128xf32, #tpu.memory_space<vmem>>, %arg7: memref<1x128xf32, #tpu.memory_space<vmem>>, %arg8: memref<1x128xf32, #tpu.memory_space<vmem>>, %arg9: memref<32x128xf32, #tpu.memory_space<vmem>>, %arg10: memref<32x128xf32, #tpu.memory_space<vmem>>) attributes {dimension_semantics = [#tpu.dimension_semantics<parallel>, #tpu.dimension_semantics<parallel>, #tpu.dimension_semantics<arbitrary>], iteration_bounds = array<i64: 1, 1, 1>, scalar_prefetch = 0 : i64, scratch_operands = 1 : i64, tpu.core_type = #tpu.core_type<tc>, window_params = [{transform_indices = @transform_0, window_bounds = array<i64: 32, 256>}, {transform_indices = @transform_1, window_bounds = array<i64: 256, 128>}, {transform_indices = @transform_2, window_bounds = array<i64: 1, 128>}, {transform_indices = @transform_3, window_bounds = array<i64: 32, 128>}, {transform_indices = @transform_4, window_bounds = array<i64: 1, 128>}, {transform_indices = @transform_5, window_bounds = array<i64: 1, 128>}, {transform_indices = @transform_6, window_bounds = array<i64: 32, 128>}]} {
    %c0_i32 = arith.constant 0 : i32
    %0 = arith.cmpi eq, %arg2, %c0_i32 : i32
    %1 = arith.extui %0 : i1 to i32
    %c0_i32_0 = arith.constant 0 : i32
    %2 = arith.cmpi ne, %1, %c0_i32_0 : i32
    scf.if %2 {
      %cst_10 = arith.constant 0.000000e+00 : f32
      %13 = vector.broadcast %cst_10 : f32 to vector<32x128xf32>
      %c0_11 = arith.constant 0 : index
      %c0_12 = arith.constant 0 : index
      %14 = vector.load %arg10[%c0_11, %c0_12] : memref<32x128xf32, #tpu.memory_space<vmem>>, vector<32x128xf32>
      tpu.vector_store %arg10[%c0_11, %c0_12], %13 {strides = array<i32>} : memref<32x128xf32, #tpu.memory_space<vmem>>, vector<32x128xf32>,
    } else {
    }
    %c0 = arith.constant 0 : index
    %c0_1 = arith.constant 0 : index
    %3 = vector.load %arg10[%c0, %c0_1] : memref<32x128xf32, #tpu.memory_space<vmem>>, vector<32x128xf32>
    %c0_2 = arith.constant 0 : index
    %c0_3 = arith.constant 0 : index
    %4 = vector.load %arg3[%c0_2, %c0_3] : memref<32x256xbf16, #tpu.memory_space<vmem>>, vector<32x256xbf16>
    %c0_4 = arith.constant 0 : index
    %c0_5 = arith.constant 0 : index
    %5 = vector.load %arg4[%c0_4, %c0_5] : memref<256x128xf32, #tpu.memory_space<vmem>>, vector<256x128xf32>
    %6 = arith.truncf %5 : vector<256x128xf32> to vector<256x128xbf16>
    %cst = arith.constant dense<0.000000e+00> : vector<32x128xf32>
    %7 = tpu.matmul %4, %6, %cst {dimension_numbers = #tpu.dot_dimension_numbers<[1], [0], [0], [1], [0, 0, 1, 1], [], []>} : vector<32x256xbf16>, vector<256x128xbf16>, vector<32x128xf32> -> vector<32x128xf32>
    %8 = arith.addf %3, %7 : vector<32x128xf32>
    %c0_6 = arith.constant 0 : index
    %c0_7 = arith.constant 0 : index
    %9 = vector.load %arg10[%c0_6, %c0_7] : memref<32x128xf32, #tpu.memory_space<vmem>>, vector<32x128xf32>
    tpu.vector_store %arg10[%c0_6, %c0_7], %8 {strides = array<i32>} : memref<32x128xf32, #tpu.memory_space<vmem>>, vector<32x128xf32>,
    %c0_i32_8 = arith.constant 0 : i32
    %10 = arith.cmpi eq, %arg2, %c0_i32_8 : i32
    %11 = arith.extui %10 : i1 to i32
    %c0_i32_9 = arith.constant 0 : i32
    %12 = arith.cmpi ne, %11, %c0_i32_9 : i32
    scf.if %12 {
      %c0_10 = arith.constant 0 : index
      %c0_11 = arith.constant 0 : index
      %13 = vector.load %arg10[%c0_10, %c0_11] : memref<32x128xf32, #tpu.memory_space<vmem>>, vector<32x128xf32>
      %c0_12 = arith.constant 0 : index
      %c0_13 = arith.constant 0 : index
      %14 = vector.load %arg5[%c0_12, %c0_13] : memref<1x128xf32, #tpu.memory_space<vmem>>, vector<1x128xf32>
      %15 = vector.broadcast %14 : vector<1x128xf32> to vector<32x128xf32>
      %16 = arith.addf %13, %15 : vector<32x128xf32>
      %c0_14 = arith.constant 0 : index
      %c0_15 = arith.constant 0 : index
      %17 = vector.load %arg6[%c0_14, %c0_15] : memref<32x128xf32, #tpu.memory_space<vmem>>, vector<32x128xf32>
      %18 = arith.addf %16, %17 : vector<32x128xf32>
      %cst_16 = arith.constant dense<0.000000e+00> : vector<32xf32>
      %19 = vector.multi_reduction <add>, %18, %cst_16 [1] : vector<32x128xf32> to vector<32xf32>
      %20 = vector.shape_cast %19 : vector<32xf32> to vector<32x1xf32>
      %cst_17 = arith.constant 1.280000e+02 : f32
      %21 = vector.broadcast %cst_17 : f32 to vector<32x1xf32>
      %22 = arith.divf %20, %21 : vector<32x1xf32>
      %23 = vector.broadcast %22 : vector<32x1xf32> to vector<32x128xf32>
      %24 = arith.subf %18, %23 : vector<32x128xf32>
      %25 = arith.mulf %24, %24 : vector<32x128xf32>
      %cst_18 = arith.constant dense<0.000000e+00> : vector<32xf32>
      %26 = vector.multi_reduction <add>, %25, %cst_18 [1] : vector<32x128xf32> to vector<32xf32>
      %27 = vector.shape_cast %26 : vector<32xf32> to vector<32x1xf32>
      %cst_19 = arith.constant 1.280000e+02 : f32
      %28 = vector.broadcast %cst_19 : f32 to vector<32x1xf32>
      %29 = arith.divf %27, %28 : vector<32x1xf32>
      %30 = vector.broadcast %22 : vector<32x1xf32> to vector<32x128xf32>
      %31 = arith.subf %18, %30 : vector<32x128xf32>
      %cst_20 = arith.constant 9.99999974E-6 : f32
      %32 = vector.broadcast %cst_20 : f32 to vector<32x1xf32>
      %33 = arith.addf %29, %32 : vector<32x1xf32>
      %34 = math.rsqrt %33 : vector<32x1xf32>
      %35 = vector.broadcast %34 : vector<32x1xf32> to vector<32x128xf32>
      %36 = arith.mulf %31, %35 : vector<32x128xf32>
      %c0_21 = arith.constant 0 : index
      %c0_22 = arith.constant 0 : index
      %37 = vector.load %arg7[%c0_21, %c0_22] : memref<1x128xf32, #tpu.memory_space<vmem>>, vector<1x128xf32>
      %38 = vector.broadcast %37 : vector<1x128xf32> to vector<32x128xf32>
      %39 = arith.mulf %36, %38 : vector<32x128xf32>
      %c0_23 = arith.constant 0 : index
      %c0_24 = arith.constant 0 : index
      %40 = vector.load %arg8[%c0_23, %c0_24] : memref<1x128xf32, #tpu.memory_space<vmem>>, vector<1x128xf32>
      %41 = vector.broadcast %40 : vector<1x128xf32> to vector<32x128xf32>
      %42 = arith.addf %39, %41 : vector<32x128xf32>
      %c0_25 = arith.constant 0 : index
      %c0_26 = arith.constant 0 : index
      %43 = vector.load %arg9[%c0_25, %c0_26] : memref<32x128xf32, #tpu.memory_space<vmem>>, vector<32x128xf32>
      tpu.vector_store %arg9[%c0_25, %c0_26], %42 {strides = array<i32>} : memref<32x128xf32, #tpu.memory_space<vmem>>, vector<32x128xf32>,
    } else {
    }
    return
  }
  func.func @transform_0(%arg0: i32, %arg1: i32, %arg2: i32) -> (i32, i32) {
    %c0_i32 = arith.constant 0 : i32
    return %arg0, %arg2 : i32, i32
  }
  func.func @transform_1(%arg0: i32, %arg1: i32, %arg2: i32) -> (i32, i32) {
    %c0_i32 = arith.constant 0 : i32
    return %arg2, %arg1 : i32, i32
  }
  func.func @transform_2(%arg0: i32, %arg1: i32, %arg2: i32) -> (i32, i32) {
    %c0_i32 = arith.constant 0 : i32
    %c0_i32_0 = arith.constant 0 : i32
    return %c0_i32, %arg1 : i32, i32
  }
  func.func @transform_3(%arg0: i32, %arg1: i32, %arg2: i32) -> (i32, i32) {
    %c0_i32 = arith.constant 0 : i32
    return %arg0, %arg1 : i32, i32
  }
  func.func @transform_4(%arg0: i32, %arg1: i32, %arg2: i32) -> (i32, i32) {
    %c0_i32 = arith.constant 0 : i32
    %c0_i32_0 = arith.constant 0 : i32
    return %c0_i32, %arg1 : i32, i32
  }
  func.func @transform_5(%arg0: i32, %arg1: i32, %arg2: i32) -> (i32, i32) {
    %c0_i32 = arith.constant 0 : i32
    %c0_i32_0 = arith.constant 0 : i32
    return %c0_i32, %arg1 : i32, i32
  }
  func.func @transform_6(%arg0: i32, %arg1: i32, %arg2: i32) -> (i32, i32) {
    %c0_i32 = arith.constant 0 : i32
    return %arg0, %arg1 : i32, i32
  }
}

</mosaic_0001>

<bundles_post_ra>
// kernel: encoder_forward.11
= control target key start
LH: loop header
LB: loop body
LE: loop exit
PB: predicated region body
PF: predicated region fallthrough
CT: control target
= control target key end

     0   :  { %s370_s1 = inlined_call_operand.vmem [shape: f32[256,128], index: 1, kind: input, shape index: {}]   ;;  %s371_s0 = inlined_call_operand.vmem [shape: f32[32,256], index: 0, kind: input, shape index: {}]   ;;  %s372_s2 = inlined_call_operand.vmem [shape: f32[1,128], index: 2, kind: input, shape index: {}]   ;;  %s373_s3 = inlined_call_operand.vmem [shape: f32[32,128], index: 3, kind: output, shape index: {}]  }
   0x1   :  { %v55_v0 = vld [vmem:[%s370_s1 + $0x80] sm:$0xff]  ;;  %v56_v1 = vld [vmem:[%s370_s1 + $0x88] sm:$0xff]  ;;  %v57_v5 = vld [vmem:[%s370_s1 + $0x90] sm:$0xff] }
   0x2   :  { %v39_v2 = vld [vmem:[%s370_s1] sm:$0xff]  ;;  %v79_v3 = vpack.c.bf16 %v56_v1, %v55_v0  ;;  %v40_v4 = vld [vmem:[%s370_s1 + $0x8] sm:$0xff]  ;;  %v58_v6 = vld [vmem:[%s370_s1 + $0x98] sm:$0xff] }
   0x3   :  { %v71_v7 = vpack.c.bf16 %v40_v4, %v39_v2  ;;  %v80_v8 = vpack.c.bf16 %v58_v6, %v57_v5  ;;  %v41_v9 = vld [vmem:[%s370_s1 + $0x10] sm:$0xff]  ;;  %v42_v10 = vld [vmem:[%s370_s1 + $0x18] sm:$0xff]  ;;  %v59_v11 = vld [vmem:[%s370_s1 + $0xa0] sm:$0xff] }
   0x4   :  { %171 = vmatprep.subr.bf16.mxu0 %v79_v3  ;;  %199 = vmatprep.subr.bf16.mxu1 %v79_v3  ;;  %v60_v12 = vld [vmem:[%s370_s1 + $0xa8] sm:$0xff]  ;;  %v72_v13 = vpack.c.bf16 %v42_v10, %v41_v9  ;;  %v43_v15 = vld [vmem:[%s370_s1 + $0x20] sm:$0xff]  ;;  %v61_v17 = vld [vmem:[%s370_s1 + $0xb0] sm:$0xff] }
   0x5   :  { %172 = vmatpush3.bf16.msra.mxu0 %v71_v7  ;;  %207 = vmatpush3.bf16.msra.mxu1 %v71_v7  ;;  %v81_v14 = vpack.c.bf16 %v60_v12, %v59_v11  ;;  %v44_v16 = vld [vmem:[%s370_s1 + $0x28] sm:$0xff]  ;;  %v62_v18 = vld [vmem:[%s370_s1 + $0xb8] sm:$0xff]  ;;  %v45_v21 = vld [vmem:[%s370_s1 + $0x30] sm:$0xff] }
   0x6   :  { %173 = vmatprep.subr.bf16.mxu0 %v80_v8  ;;  %200 = vmatprep.subr.bf16.mxu1 %v80_v8  ;;  %v73_v19 = vpack.c.bf16 %v44_v16, %v43_v15  ;;  %v82_v20 = vpack.c.bf16 %v62_v18, %v61_v17  ;;  %v46_v22 = vld [vmem:[%s370_s1 + $0x38] sm:$0xff]  ;;  %v63_v23 = vld [vmem:[%s370_s1 + $0xc0] sm:$0xff]  ;;  %v64_v24 = vld [vmem:[%s370_s1 + $0xc8] sm:$0xff] }
   0x7   :  { %v28_v25 = vld [vmem:[%s371_s0 + $0x8] sm:$0xff]  ;;  %v30_v26 = vld [vmem:[%s371_s0 + $0x18] sm:$0xff]  ;;  %v74_v29 = vpack.c.bf16 %v46_v22, %v45_v21  ;;  %v83_v32 = vpack.c.bf16 %v64_v24, %v63_v23  ;;  %v47_v33 = vld [vmem:[%s370_s1 + $0x40] sm:$0xff] }
   0x8   :  { %v32_v27 = vld [vmem:[%s371_s0 + $0x28] sm:$0xff]  ;;  %v34_v28 = vld [vmem:[%s371_s0 + $0x38] sm:$0xff]  ;;  %v36_v30 = vpack.c.bf16 %v30_v26, %v28_v25  ;;  %v65_v35 = vld [vmem:[%s370_s1 + $0xd0] sm:$0xff] }
   0x9   :  { %174 = vmatpush3.bf16.msra.mxu0 %v72_v13  ;;  %208 = vmatpush3.bf16.msra.mxu1 %v72_v13  ;;  %v38_v31 = vpack.c.bf16 %v34_v28, %v32_v27  ;;  %v48_v34 = vld [vmem:[%s370_s1 + $0x48] sm:$0xff]  ;;  %v66_v36 = vld [vmem:[%s370_s1 + $0xd8] sm:$0xff]  ;;  %v49_v39 = vld [vmem:[%s370_s1 + $0x50] sm:$0xff] }
   0xa   :  { %175 = vmatprep.subr.bf16.mxu0 %v81_v14  ;;  %201 = vmatprep.subr.bf16.mxu1 %v81_v14  ;;  %v75_v37 = vpack.c.bf16 %v48_v34, %v47_v33  ;;  %v84_v38 = vpack.c.bf16 %v66_v36, %v65_v35  ;;  %v50_v40 = vld [vmem:[%s370_s1 + $0x58] sm:$0xff]  ;;  %v67_v41 = vld [vmem:[%s370_s1 + $0xe0] sm:$0xff]  ;;  %v68_v42 = vld [vmem:[%s370_s1 + $0xe8] sm:$0xff] }
   0xb   :  { %119 = vmatprep.mubr.bf16.mxu0 %v36_v30  ;;  %127 = vmatprep.mubr.bf16.mxu1 %v38_v31  ;;  %v76_v43 = vpack.c.bf16 %v50_v40, %v49_v39  ;;  %v85_v44 = vpack.c.bf16 %v68_v42, %v67_v41  ;;  %v51_v45 = vld [vmem:[%s370_s1 + $0x60] sm:$0xff]  ;;  %v52_v46 = vld [vmem:[%s370_s1 + $0x68] sm:$0xff]  ;;  %v69_v47 = vld [vmem:[%s370_s1 + $0xf0] sm:$0xff] }
   0xc   :  { %v70_v48 = vld [vmem:[%s370_s1 + $0xf8] sm:$0xff]  ;;  %v77_v49 = vpack.c.bf16 %v52_v46, %v51_v45  ;;  %v53_v51 = vld [vmem:[%s370_s1 + $0x70] sm:$0xff]  ;;  %v27_v53 = vld [vmem:[%s371_s0] sm:$0xff] }
   0xd   :  { %176 = vmatpush3.bf16.msra.mxu0 %v73_v19  ;;  %209 = vmatpush3.bf16.msra.mxu1 %v73_v19  ;;  %v86_v50 = vpack.c.bf16 %v70_v48, %v69_v47  ;;  %v54_v52 = vld [vmem:[%s370_s1 + $0x78] sm:$0xff]  ;;  %v29_v55 = vld [vmem:[%s371_s0 + $0x10] sm:$0xff]  ;;  %v31_v56 = vld [vmem:[%s371_s0 + $0x20] sm:$0xff] }
   0xe   :  { %177 = vmatprep.subr.bf16.mxu0 %v82_v20  ;;  %202 = vmatprep.subr.bf16.mxu1 %v82_v20  ;;  %v78_v54 = vpack.c.bf16 %v54_v52, %v53_v51  ;;  %v33_v57 = vld [vmem:[%s371_s0 + $0x30] sm:$0xff]  ;;  %v35_v58 = vpack.c.bf16 %v29_v55, %v27_v53  ;;  %v170_v63 = vld [vmem:[%s372_s2] ss:$0 sm:$0xff] }
   0xf   :  { %v37_v59 = vpack.c.bf16 %v33_v57, %v31_v56 }
  0x11   :  { %178 = vmatpush3.bf16.msra.mxu0 %v74_v29  ;;  %210 = vmatpush3.bf16.msra.mxu1 %v74_v29 }
  0x12   :  { %179 = vmatprep.subr.bf16.mxu0 %v83_v32  ;;  %203 = vmatprep.subr.bf16.mxu1 %v83_v32 }
  0x15   :  { %180 = vmatpush3.bf16.msra.mxu0 %v75_v37  ;;  %211 = vmatpush3.bf16.msra.mxu1 %v75_v37 }
  0x16   :  { %181 = vmatprep.subr.bf16.mxu0 %v84_v38  ;;  %204 = vmatprep.subr.bf16.mxu1 %v84_v38 }
  0x19   :  { %182 = vmatpush3.bf16.msra.mxu0 %v76_v43  ;;  %212 = vmatpush3.bf16.msra.mxu1 %v76_v43 }
  0x1a   :  { %183 = vmatprep.subr.bf16.mxu0 %v85_v44  ;;  %205 = vmatprep.subr.bf16.mxu1 %v85_v44 }
  0x1d   :  { %184 = vmatpush3.bf16.msra.mxu0 %v77_v49  ;;  %213 = vmatpush3.bf16.msra.mxu1 %v77_v49 }
  0x1e   :  { %185 = vmatprep.subr.bf16.mxu0 %v86_v50  ;;  %206 = vmatprep.subr.bf16.mxu1 %v86_v50 }
  0x21   :  { %186 = vmatpush3.bf16.msra.mxu0 %v78_v54  ;;  %214 = vmatpush3.bf16.msra.mxu1 %v78_v54 }
  0x24   :  { %120 = vmatmul.mubr.bf16.vlgmr.msra.gmra.mrb[0].mxu0 %v35_v58  ;;  %128 = vmatmul.mubr.bf16.vlgmr.msra.gmra.mrb[0].mxu1 %v37_v59 }
  0xf7   :  { %v187_v60 = vpop.f32.mrb[0].mxu0  ;;  %v193_v61 = vpop.f32.mrb[0].mxu1 }
  0xf8   :  { %v188_v62 = vpop.f32.mrb[1].mxu0  ;;  %v194_v0 = vpop.f32.mrb[1].mxu1 }
  0xf9   :  { %v189_v1 = vadd.f32 %v188_v62, %v187_v60  ;;  %v195_v2 = vadd.f32 %v194_v0, %v193_v61  ;;  %v190_v3 = vpop.f32.mrb[2].mxu0  ;;  %v196_v4 = vpop.f32.mrb[2].mxu1 }
  0xfa   :  { %v191_v5 = vpop.f32.mrb[3].mxu0  ;;  %v197_v6 = vpop.f32.mrb[3].mxu1 }
  0xfb   :  { %v158_v7 = vadd.f32 %v189_v1, %v170_v63  ;;  %v160_v8 = vadd.f32 %v195_v2, %v170_v63  ;;  %v192_v9 = vadd.f32 %v191_v5, %v190_v3  ;;  %v198_v10 = vadd.f32 %v197_v6, %v196_v4 }
  0xfd   :  { %162 = vst [vmem:[%s373_s3] sm:$0xff] %v158_v7  ;;  %164 = vst [vmem:[%s373_s3 + $0x10] sm:$0xff] %v160_v8  ;;  %v159_v11 = vadd.f32 %v192_v9, %v170_v63  ;;  %v161_v12 = vadd.f32 %v198_v10, %v170_v63 }
  0xff   :  { %163 = vst [vmem:[%s373_s3 + $0x8] sm:$0xff] %v159_v11  ;;  %165 = vst [vmem:[%s373_s3 + $0x18] sm:$0xff] %v161_v12 }

// kernel: encoder_forward.12
= control target key start
LH: loop header
LB: loop body
LE: loop exit
PB: predicated region body
PF: predicated region fallthrough
CT: control target
= control target key end

     0   :  { %s644_s0 = inlined_call_operand.vmem [shape: f32[32,128], index: 0, kind: input, shape index: {}]   ;;  %s645_s3 = inlined_call_operand.vmem [shape: f32[128,384], index: 3, kind: input, shape index: {}]   ;;  %s646_s1 = inlined_call_operand.vmem [shape: f32[1,128], index: 1, kind: input, shape index: {}]   ;;  %s647_s2 = inlined_call_operand.vmem [shape: f32[1,128], index: 2, kind: input, shape index: {}]   ;;  %s648_s4 = inlined_call_operand.vmem [shape: f32[1,384], index: 4, kind: input, shape index: {}]   ;;  %s649_s5 = inlined_call_operand.vmem [shape: bf16[32,384], index: 5, kind: output, shape index: {}]  }
   0x1   :  { %v25_v0 = vld [vmem:[%s644_s0] sm:$0xff]  ;;  %v27_v1 = vld [vmem:[%s644_s0 + $0x10] sm:$0xff]  ;;  %v26_v2 = vld [vmem:[%s644_s0 + $0x8] sm:$0xff] }
   0x2   :  { %29 = vadd.xlane.f32.xlu0 %v25_v0  ;;  %33 = vadd.xlane.f32.xlu1 %v27_v1  ;;  %v28_v3 = vld [vmem:[%s644_s0 + $0x18] sm:$0xff]  ;;  %v103_v4 = vld [vmem:[%s645_s3 + $0x8] sm:$0xff]  ;;  %v106_v5 = vld [vmem:[%s645_s3 + $0x20] sm:$0xff] }
   0x3   :  { %v102_v6 = vld [vmem:[%s645_s3] sm:$0xff]  ;;  %v151_v7 = vpack.c.bf16 %v106_v5, %v103_v4  ;;  %v105_v8 = vld [vmem:[%s645_s3 + $0x18] sm:$0xff]  ;;  %v112_v10 = vld [vmem:[%s645_s3 + $0x50] sm:$0xff] }
   0x4   :  { %v109_v9 = vld [vmem:[%s645_s3 + $0x38] sm:$0xff]  ;;  %v150_v11 = vpack.c.bf16 %v105_v8, %v102_v6  ;;  %v104_v13 = vld [vmem:[%s645_s3 + $0x10] sm:$0xff]  ;;  %v107_v14 = vld [vmem:[%s645_s3 + $0x28] sm:$0xff] }
   0x5   :  { %v154_v12 = vpack.c.bf16 %v112_v10, %v109_v9  ;;  %191 = vmatprep.subr.bf16.mxu0 %v151_v7  ;;  %v152_v15 = vpack.c.bf16 %v107_v14, %v104_v13  ;;  %v108_v32 = vld [vmem:[%s645_s3 + $0x30] sm:$0xff]  ;;  %v111_v33 = vld [vmem:[%s645_s3 + $0x48] sm:$0xff]  ;;  %v118_v36 = vld [vmem:[%s645_s3 + $0x80] sm:$0xff]  ;;  %v402_v10 = vmov 0  }
   0x6   :  { %31 = vadd.xlane.f32.xlu0 %v26_v2  ;;  %35 = vadd.xlane.f32.xlu1 %v28_v3  ;;  %v153_v34 = vpack.c.bf16 %v111_v33, %v108_v32  ;;  %v115_v35 = vld [vmem:[%s645_s3 + $0x68] sm:$0xff]  ;;  %v110_v37 = vld [vmem:[%s645_s3 + $0x40] sm:$0xff]  ;;  %v113_v39 = vld [vmem:[%s645_s3 + $0x58] sm:$0xff] }
   0x7   :  { %192 = vmatpush1.bf16.msra.mxu0 %v150_v11  ;;  %373 = vmatprep.subr.bf16.mxu1 %v152_v15  ;;  %v157_v38 = vpack.c.bf16 %v118_v36, %v115_v35  ;;  %v155_v40 = vpack.c.bf16 %v113_v39, %v110_v37  ;;  %v114_v41 = vld [vmem:[%s645_s3 + $0x60] sm:$0xff]  ;;  %v117_v42 = vld [vmem:[%s645_s3 + $0x78] sm:$0xff]  ;;  %v124_v45 = vld [vmem:[%s645_s3 + $0xb0] sm:$0xff] }
   0x8   :  { %193 = vmatprep.subr.bf16.mxu0 %v154_v12  ;;  %374 = vmatpush3.bf16.msra.mxu1 %v152_v15  ;;  %v156_v43 = vpack.c.bf16 %v117_v42, %v114_v41  ;;  %v121_v44 = vld [vmem:[%s645_s3 + $0x98] sm:$0xff]  ;;  %v116_v46 = vld [vmem:[%s645_s3 + $0x70] sm:$0xff]  ;;  %v119_v48 = vld [vmem:[%s645_s3 + $0x88] sm:$0xff] }
   0x9   :  { %375 = vmatprep.subr.bf16.mxu1 %v155_v40  ;;  %v160_v47 = vpack.c.bf16 %v124_v45, %v121_v44  ;;  %v120_v49 = vld [vmem:[%s645_s3 + $0x90] sm:$0xff]  ;;  %v123_v50 = vld [vmem:[%s645_s3 + $0xa8] sm:$0xff]  ;;  %v158_v51 = vpack.c.bf16 %v119_v48, %v116_v46  ;;  %v130_v54 = vld [vmem:[%s645_s3 + $0xe0] sm:$0xff]  ;;  %223 = vmatprep.mubr.bf16.mxu0 %v402_v10 }
   0xa   :  { %v159_v52 = vpack.c.bf16 %v123_v50, %v120_v49  ;;  %v127_v53 = vld [vmem:[%s645_s3 + $0xc8] sm:$0xff]  ;;  %v122_v55 = vld [vmem:[%s645_s3 + $0xa0] sm:$0xff]  ;;  %v125_v57 = vld [vmem:[%s645_s3 + $0xb8] sm:$0xff] }
   0xb   :  { %194 = vmatpush1.bf16.msra.mxu0 %v153_v34  ;;  %v163_v56 = vpack.c.bf16 %v130_v54, %v127_v53  ;;  %v126_v58 = vld [vmem:[%s645_s3 + $0xc0] sm:$0xff]  ;;  %v129_v59 = vld [vmem:[%s645_s3 + $0xd8] sm:$0xff]  ;;  %v161_v60 = vpack.c.bf16 %v125_v57, %v122_v55  ;;  %v136_v63 = vld [vmem:[%s645_s3 + $0x110] sm:$0xff] }
   0xc   :  { %195 = vmatprep.subr.bf16.mxu0 %v157_v38  ;;  %376 = vmatpush3.bf16.msra.mxu1 %v155_v40  ;;  %v162_v61 = vpack.c.bf16 %v129_v59, %v126_v58  ;;  %v133_v62 = vld [vmem:[%s645_s3 + $0xf8] sm:$0xff]  ;;  %v135_v4 = vld [vmem:[%s645_s3 + $0x108] sm:$0xff]  ;;  %v142_v8 = vld [vmem:[%s645_s3 + $0x140] sm:$0xff] }
   0xd   :  { %377 = vmatprep.subr.bf16.mxu1 %v158_v51  ;;  %v139_v7 = vld [vmem:[%s645_s3 + $0x128] sm:$0xff]  ;;  %v134_v9 = vld [vmem:[%s645_s3 + $0x100] sm:$0xff]  ;;  %v137_v12 = vld [vmem:[%s645_s3 + $0x118] sm:$0xff] }
   0xe   :  { %v169_v11 = vpack.c.bf16 %v142_v8, %v139_v7  ;;  %v138_v13 = vld [vmem:[%s645_s3 + $0x120] sm:$0xff]  ;;  %v141_v14 = vld [vmem:[%s645_s3 + $0x138] sm:$0xff]  ;;  %v167_v15 = vpack.c.bf16 %v137_v12, %v134_v9 }
   0xf   :  { %196 = vmatpush1.bf16.msra.mxu0 %v156_v43 }
  0x10   :  { %197 = vmatprep.subr.bf16.mxu0 %v160_v47  ;;  %378 = vmatpush3.bf16.msra.mxu1 %v158_v51  ;;  %v345_v47 = vld [vmem:[%s646_s1] ss:$0 sm:$0xff] }
  0x11   :  { %379 = vmatprep.subr.bf16.mxu1 %v161_v60 }
  0x13   :  { %198 = vmatpush1.bf16.msra.mxu0 %v159_v52  ;;  %v346_v52 = vld [vmem:[%s647_s2] ss:$0 sm:$0xff] }
  0x14   :  { %199 = vmatprep.subr.bf16.mxu0 %v163_v56  ;;  %380 = vmatpush3.bf16.msra.mxu1 %v161_v60 }
  0x17   :  { %200 = vmatpush1.bf16.msra.mxu0 %v162_v61 }
  0x8f   :  { %v30_v16 = vpop.xlane.xlu0 %29  ;;  %v34_v17 = vpop.xlane.xlu1 %33 }
  0x90   :  { %v38_v18 = vmul.f32 0.0078125, %v30_v16  ;;  %v40_v19 = vmul.f32 0.0078125, %v34_v17  ;;  %v145_v16 = vld [vmem:[%s645_s3 + $0x158] sm:$0xff]  ;;  %v148_v17 = vld [vmem:[%s645_s3 + $0x170] sm:$0xff] }
  0x92   :  { %v469_v20 = vsub.f32 %v25_v0, %v38_v18  ;;  %v471_v21 = vsub.f32 %v27_v1, %v40_v19  ;;  %v128_v0 = vld [vmem:[%s645_s3 + $0xd0] sm:$0xff]  ;;  %v166_v1 = vpack.c.bf16 %v136_v63, %v133_v62  ;;  %v168_v19 = vpack.c.bf16 %v141_v14, %v138_v13 }
  0x93   :  { %v32_v22 = vpop.xlane.xlu0 %31  ;;  %v36_v23 = vpop.xlane.xlu1 %35  ;;  %v140_v18 = vld [vmem:[%s645_s3 + $0x130] sm:$0xff]  ;;  %v176_v63 = vlaneseq }
  0x94   :  { %v39_v24 = vmul.f32 0.0078125, %v32_v22  ;;  %v46_v25 = vmul.f32 %v469_v20, %v469_v20  ;;  %v41_v26 = vmul.f32 0.0078125, %v36_v23  ;;  %v48_v29 = vmul.f32 %v471_v21, %v471_v21  ;;  %201 = vmatprep.subr.bf16.mxu0 %v166_v1  ;;  %v143_v22 = vld [vmem:[%s645_s3 + $0x148] sm:$0xff]  ;;  %v174_v1 = vld [vmem:[%s648_s4] sm:$0x7] }
  0x95   :  { %v172_v23 = vpack.c.bf16 %v148_v17, %v145_v16 }
  0x96   :  { %v475_v27 = vsub.f32 %v26_v2, %v39_v24  ;;  %50 = vadd.xlane.f32.xlu0 %v46_v25  ;;  %v477_v28 = vsub.f32 %v28_v3, %v41_v26  ;;  %v131_v2 = vld [vmem:[%s645_s3 + $0xe8] sm:$0xff]  ;;  %v132_v3 = vld [vmem:[%s645_s3 + $0xf0] sm:$0xff]  ;;  %v170_v26 = vpack.c.bf16 %v143_v22, %v140_v18 }
  0x97   :  { %v164_v5 = vpack.c.bf16 %v131_v2, %v128_v0  ;;  %v165_v6 = vpack.c.bf16 %v135_v4, %v132_v3  ;;  %v144_v24 = vld [vmem:[%s645_s3 + $0x150] sm:$0xff]  ;;  %v147_v25 = vld [vmem:[%s645_s3 + $0x168] sm:$0xff] }
  0x98   :  { %v47_v30 = vmul.f32 %v475_v27, %v475_v27  ;;  %v49_v31 = vmul.f32 %v477_v28, %v477_v28 }
  0x99   :  { %381 = vmatprep.subr.bf16.mxu1 %v164_v5  ;;  %202 = vmatpush1.bf16.msra.mxu0 %v165_v6 }
  0x9a   :  { %54 = vadd.xlane.f32.xlu0 %v48_v29  ;;  %52 = vadd.xlane.f32.xlu1 %v47_v30  ;;  %v171_v29 = vpack.c.bf16 %v147_v25, %v144_v24  ;;  %v146_v30 = vld [vmem:[%s645_s3 + $0x160] sm:$0xff] }
  0x9b   :  { %382 = vmatpush3.bf16.msra.mxu1 %v164_v5  ;;  %203 = vmatprep.subr.bf16.mxu0 %v169_v11 }
  0x9c   :  { %383 = vmatprep.subr.bf16.mxu1 %v167_v15 }
  0x9d   :  { %204 = vmatpush1.bf16.msra.mxu0 %v168_v19 }
  0x9e   :  { %56 = vadd.xlane.f32.xlu1 %v49_v31  ;;  %205 = vmatprep.subr.bf16.mxu0 %v172_v23  ;;  %v149_v31 = vld [vmem:[%s645_s3 + $0x178] sm:$0xff] }
  0x9f   :  { %384 = vmatpush3.bf16.msra.mxu1 %v167_v15  ;;  %v173_v32 = vpack.c.bf16 %v149_v31, %v146_v30 }
  0xa0   :  { %385 = vmatprep.subr.bf16.mxu1 %v170_v26 }
  0xa1   :  { %206 = vmatpush1.bf16.msra.mxu0 %v171_v29 }
  0xa3   :  { %386 = vmatpush3.bf16.msra.mxu1 %v170_v26 }
  0xa4   :  { %387 = vmatprep.subr.bf16.mxu1 %v173_v32 }
  0xa7   :  { %388 = vmatpush3.bf16.msra.mxu1 %v173_v32 }
 0x123   :  { %v51_v33 = vpop.xlane.xlu0 %50 }
 0x124   :  { %v58_v34 = vmul.f32 0.0078125, %v51_v33 }
 0x126   :  { %v62_v35 = vadd.f32 1e-05, %v58_v34 }
 0x127   :  { %v53_v36 = vpop.xlane.xlu1 %52  ;;  %v55_v37 = vpop.xlane.xlu0 %54 }
 0x128   :  { %394 = vrsqrt.f32 %v62_v35  ;;  %v59_v38 = vmul.f32 0.0078125, %v53_v36  ;;  %v60_v39 = vmul.f32 0.0078125, %v55_v37 }
 0x12a   :  { %v63_v40 = vadd.f32 1e-05, %v59_v38  ;;  %v64_v41 = vadd.f32 1e-05, %v60_v39 }
 0x12b   :  { %v57_v42 = vpop.xlane.xlu1 %56 }
 0x12c   :  { %396 = vrsqrt.f32 %v63_v40  ;;  %v61_v43 = vmul.f32 0.0078125, %v57_v42 }
 0x12d   :  { %398 = vrsqrt.f32 %v64_v41 }
 0x12e   :  { %v65_v44 = vadd.f32 1e-05, %v61_v43 }
 0x130   :  { %400 = vrsqrt.f32 %v65_v44 }
 0x132   :  { %v395_v45 = vpop.eup %394 }
 0x133   :  { %v70_v46 = vmul.f32 %v395_v45, %v469_v20 }
 0x135   :  { %v81_v51 = vmul.f32 %v345_v47, %v70_v46 }
 0x136   :  { %v397_v48 = vpop.eup %396 }
 0x137   :  { %v399_v49 = vpop.eup %398  ;;  %v71_v50 = vmul.f32 %v397_v48, %v475_v27  ;;  %v92_v56 = vadd.f32 %v346_v52, %v81_v51 }
 0x138   :  { %v72_v53 = vmul.f32 %v399_v49, %v471_v21  ;;  %v177_v21 = vshrl.u32 %v176_v63, 7 }
 0x139   :  { %v82_v54 = vmul.f32 %v345_v47, %v71_v50 }
 0x13a   :  { %v401_v55 = vpop.eup %400  ;;  %v83_v58 = vmul.f32 %v345_v47, %v72_v53  ;;  %v178_v0 = vsub.s32 0, %v177_v21  ;;  %v186_v3 = vsub.s32 2, %v177_v21 }
 0x13b   :  { %v93_v57 = vadd.f32 %v346_v52, %v82_v54  ;;  %v73_v20 = vmul.f32 %v401_v55, %v477_v28  ;;  %v182_v28 = vsub.s32 1, %v177_v21 }
 0x13c   :  { %v94_v61 = vadd.f32 %v346_v52, %v83_v58  ;;  %v179_v2 = vrot.slane %v174_v1, %v178_v0  ;;  %v187_v8 = vrot.slane %v174_v1, %v186_v3 }
 0x13d   :  { %v96_v59 = vpack.c.bf16 %v93_v57, %v92_v56  ;;  %v84_v60 = vmul.f32 %v345_v47, %v73_v20  ;;  %v183_v4 = vrot.slane %v174_v1, %v182_v28 }
 0x13f   :  { %224 = vmatmul.mubr.bf16.vlgmr.msra.gmra.mrb[0].mxu0 %v96_v59  ;;  %389 = vmatprep.mubr.bf16.mxu1 %v96_v59  ;;  %v95_v27 = vadd.f32 %v346_v52, %v84_v60 }
 0x140   :  { %233 = vmatprep.mubr.bf16.mxu0 %v402_v10 }
 0x141   :  { %v97_v62 = vpack.c.bf16 %v95_v27, %v94_v61 }
 0x143   :  { %390 = vmatmul.mubr.bf16.vlgmr.msra.gmra.mrb[0].mxu1 %v97_v62 }
 0x147   :  { %234 = vmatmul.mubr.bf16.gmra.mrb[4].mxu0 %v97_v62 }
 0x212   :  { %v225_v5 = vpop.f32.mrb[0].mxu0 }
 0x213   :  { %v226_v6 = vadd.f32 %v225_v5, %v179_v2  ;;  %v227_v7 = vpop.f32.mrb[1].mxu0 }
 0x214   :  { %v228_v9 = vadd.f32 %v227_v7, %v183_v4  ;;  %v229_v10 = vpop.f32.mrb[2].mxu0 }
 0x215   :  { %v230_v11 = vadd.f32 %v229_v10, %v179_v2  ;;  %v231_v12 = vpop.f32.mrb[3].mxu0 }
 0x216   :  { %v355_v13 = vpack.c.bf16 %v228_v9, %v226_v6  ;;  %v232_v14 = vadd.f32 %v231_v12, %v183_v4  ;;  %v391_v15 = vpop.f32.mrb[0].mxu1 }
 0x217   :  { %v287_v16 = vadd.f32 %v391_v15, %v187_v8  ;;  %v278_v17 = vpop.f32.mrb[1].mxu1 }
 0x218   :  { %333 = vst [vmem:[%s649_s5] sm:$0xff] %v355_v13  ;;  %v357_v18 = vpack.c.bf16 %v232_v14, %v230_v11  ;;  %v279_v19 = vadd.f32 %v278_v17, %v187_v8  ;;  %v392_v22 = vpop.f32.mrb[2].mxu1 }
 0x219   :  { %v360_v23 = vpack.c.bf16 %v287_v16, %v287_v16  ;;  %v290_v24 = vadd.f32 %v392_v22, %v187_v8  ;;  %v281_v25 = vpop.f32.mrb[3].mxu1 }
 0x21a   :  { %335 = vst [vmem:[%s649_s5 + $0xc] sm:$0xff] %v357_v18  ;;  %v356_v26 = vpack.c.bf16 %v279_v19, %v279_v19  ;;  %v282_v29 = vadd.f32 %v281_v25, %v187_v8  ;;  %v235_v30 = vpop.f32.mrb[4].mxu0 }
 0x21b   :  { %338 = vst [vmem:[%s649_s5 + $0x20] sm:$0xf] %v360_v23  ;;  %v362_v31 = vpack.c.bf16 %v290_v24, %v290_v24  ;;  %v236_v32 = vadd.f32 %v235_v30, %v179_v2  ;;  %v237_v33 = vpop.f32.mrb[5].mxu0 }
 0x21c   :  { %334 = vst [vmem:[%s649_s5 + $0x8] sm:$0xf] %v356_v26  ;;  %v358_v34 = vpack.c.bf16 %v282_v29, %v282_v29  ;;  %v238_v35 = vadd.f32 %v237_v33, %v183_v4  ;;  %v239_v36 = vpop.f32.mrb[6].mxu0 }
 0x21d   :  { %340 = vst [vmem:[%s649_s5 + $0x2c] sm:$0xf] %v362_v31  ;;  %v240_v37 = vadd.f32 %v239_v36, %v179_v2  ;;  %v241_v38 = vpop.f32.mrb[7].mxu0 }
 0x21e   :  { %336 = vst [vmem:[%s649_s5 + $0x14] sm:$0xf] %v358_v34  ;;  %v359_v39 = vpack.c.bf16 %v238_v35, %v236_v32  ;;  %v242_v40 = vadd.f32 %v241_v38, %v183_v4 }
 0x220   :  { %337 = vst [vmem:[%s649_s5 + $0x18] sm:$0xff] %v359_v39  ;;  %v361_v41 = vpack.c.bf16 %v242_v40, %v240_v37 }
 0x222   :  { %339 = vst [vmem:[%s649_s5 + $0x24] sm:$0xff] %v361_v41 }

// kernel: encoder_forward.13
= control target key start
LH: loop header
LB: loop body
LE: loop exit
PB: predicated region body
PF: predicated region fallthrough
CT: control target
= control target key end

     0   :  { %s904_s6 = smov 0   ;;  %s1024_s0 = inlined_call_operand.vmem [shape: bf16[2,16,384], index: 0, kind: input, shape index: {}]   ;;  %s1025_s1 = inlined_call_operand.vmem [shape: bf16[2,16,128], index: 1, kind: output, shape index: {}]  }
   0x1 LB: > { %s731_s7 = sadd.s32 4294967295, %s887_s6   ;;  %p735_p0 = scmp.ge.s32.totalorder %s887_s6, 1  ;;  %s887_s6 = sphi %s904_s6, %s11_s6  }
   0x2   : > { %p87_p1 = scmp.lt.s32.totalorder %s887_s6, 3 }
   0x4   : > { %p88_p2 = pnand %p735_p0, %p87_p1 }
   0x5   : > { %p107_p3 = scmp.lt.s32.totalorder (!%p88_p2), %s731_s7, 1  ;;  %v889_v0 = vmov (!%p88_p2), 0.0   ;;  %vm890_vm0 = vmmov (!%p88_p2), 0   ;;  %vm135_vm1 = vcmask (!%p88_p2), 261120   ;;  %s891_s12 = smov (!%p88_p2), 96   ;;  %vm183_vm2 = vcmask (!%p88_p2), 130048  }
   0x6   : > { %91 = sbr.rel (%p88_p2) target bundleno = 1183 (0x49f), region = 24  ;;  %785 = vmatprep.subr.bf16.mxu0 (!%p88_p2), %v889_v0  ;;  %787 = vmatprep.mubr.msk.bf16.mxu0 (!%p88_p2), %vm890_vm0, %v889_v0  ;;  %s892_s13 = smov (!%p88_p2), 64   ;;  %vm265_vm3 = vcmask (!%p88_p2), 257024   ;;  %vm401_vm4 = vcmask (!%p88_p2), 519424   ;;  %vm537_vm5 = vcmask (!%p88_p2), 781824   ;;  %vm673_vm6 = vcmask (!%p88_p2), 1044224  }
   0x7   : > { %791 = vmatprep.subr.bf16.mxu1 (!%p88_p2), %v889_v0  ;;  %793 = vmatprep.mubr.msk.bf16.mxu1 (!%p88_p2), %vm890_vm0, %v889_v0  ;;  %s893_s14 = smov (!%p88_p2), 32  }
   0xd   : > { %s1027_s7 = smov (!%p107_p3, %s731_s7), 1 }
   0xe   : > { %s833_s8 = smul.u32 24, %s1027_s7  ;;  %s760_s15 = sshll.u32 %s1027_s7, 3 }
   0xf   : > { %s1002_s18 = scalar_lea.vmem %s1025_s1, %s760_s15 }
  0x10   : > { %s111_s11 = scalar_lea.vmem %s1024_s0, %s833_s8 }
  0x11   : > { %v119_v1 = vld [vmem:[%s111_s11] sm:$0xff]  ;;  %v121_v2 = vld [vmem:[%s111_s11 + $0xc] sm:$0xff]  ;;  %v936_v14 = vld [vmem:[%s111_s11 + $0x8] ss:$12 sps:$4 sm:$0xff]  }
  0x12   : > { %v740_v3 = vcombine.high %v119_v1, %v121_v2  ;;  %v123_v5 = vmul.bf16 1043676725, %v119_v1  ;;  %v124_v6 = vmul.bf16 1043676725, %v121_v2  ;;  %792 = vmatpush3.bf16.msra.mxu1 %v936_v14 }
  0x13   : > { %797 = vmatprep.subr.bf16.mxu1 %v889_v0 }
  0x14   : > { %v140_v4 = vsel %vm135_vm1, %v740_v3, 0  ;;  %v739_v7 = vcombine.low %v123_v5, %v124_v6  ;;  %270 = vrot.lane.b32.xlu1 %v740_v3, %s891_s12 }
  0x15   : > { %786 = vmatpush3.bf16.xpose.msra.mxu0 %v140_v4 }
  0x16   : > { %803 = vmatprep.subr.bf16.mxu0 %v889_v0 }
  0x18   : > { %268 = vrot.lane.b32.xlu1 %v739_v7, %s891_s12 }
  0x1c   : > { %788 = vmatmul.mubr.msk.bf16.vlgmr.msra.gmra.mrb[0].mxu0 %vm135_vm1, %v739_v7  ;;  %404 = vrot.lane.b32.xlu1 %v739_v7, %s892_s13 }
  0x1d   : > { %805 = vmatprep.mubr.msk.bf16.mxu0 %vm890_vm0, %v889_v0 }
  0x20   : > { %542 = vrot.lane.b32.xlu1 %v740_v3, %s893_s14 }
  0x24   : > { %540 = vrot.lane.b32.xlu1 %v739_v7, %s893_s14 }
  0x86   : > { %v271_v21 = vpop.permute.xlu1 %270 }
  0x87   : > { %v276_v24 = vsel %vm135_vm1, %v271_v21, 0 }
  0x8a   : > { %v269_v26 = vpop.permute.xlu1 %268 }
  0x8e   : > { %v405_v28 = vpop.permute.xlu1 %404 }
  0x92   : > { %v543_v30 = vpop.permute.xlu1 %542 }
  0x93   : > { %v548_v31 = vsel %vm135_vm1, %v543_v30, 0 }
  0x96   : > { %v541_v32 = vpop.permute.xlu1 %540 }
  0xef   : > { %v176_v8 = vpop.f32.mrb[0].mxu0 }
  0xf0   : > { %v789_v9 = vpop.f32.mrb[1].mxu0  ;;  %v184_v10 = vsel %vm183_vm2, %v176_v8, -inf }
  0xf1   : > { %185 = vmax.xlane.f32.xlu0 %v184_v10  ;;  %v179_v11 = vpop.f32.mrb[2].mxu0 }
  0xf2   : > { %v790_v12 = vpop.f32.mrb[3].mxu0  ;;  %v187_v13 = vsel %vm183_vm2, %v179_v11, -inf }
  0xf5   : > { %188 = vmax.xlane.f32.xlu0 %v187_v13 }
 0x10b   : > { %406 = vrot.lane.b32.xlu0 %v740_v3, %s892_s13 }
 0x17e   : > { %v186_v15 = vpop.xlane.xlu0 %185 }
 0x17f   : > { %v190_v16 = vsub.f32 %v176_v8, %v186_v15 }
 0x181   : > { %v192_v17 = vmul.f32 1.442695, %v190_v16 }
 0x182   : > { %v189_v18 = vpop.xlane.xlu0 %188 }
 0x183   : > { %v191_v19 = vsub.f32 %v179_v11, %v189_v18  ;;  %849 = vpow2.f32 %v192_v17 }
 0x185   : > { %v194_v20 = vmul.f32 1.442695, %v191_v19 }
 0x186   : > { %v407_v27 = vpop.permute.xlu0 %406 }
 0x187   : > { %851 = vpow2.f32 %v194_v20  ;;  %v412_v29 = vsel %vm135_vm1, %v407_v27, 0 }
 0x18d   : > { %v941_v22 = vpop.eup %849 }
 0x18e   : > { %v196_v21 = vsel %vm183_vm2, %v941_v22, 0.0 }
 0x191   : > { %v943_v23 = vpop.eup %851 }
 0x192   : > { %v202_v25 = vpack.c.bf16 %v943_v23, %v941_v22 }
 0x194   : > { %794 = vmatmul.mubr.msk.bf16.vlgmr.msra.gmra.mrb[0].mxu1 %vm183_vm2, %v202_v25 }
 0x195   : > { %798 = vmatpush3.bf16.xpose.msra.mxu1 %v276_v24  ;;  %799 = vmatprep.mubr.msk.bf16.mxu1 %vm890_vm0, %v889_v0 }
 0x196   : > { %809 = vmatprep.subr.bf16.mxu1 %v889_v0 }
 0x19c   : > { %800 = vmatmul.mubr.msk.bf16.vlgmr.msra.gmra.mrb[4].mxu1 %vm135_vm1, %v269_v26 }
 0x19d   : > { %810 = vmatpush3.bf16.xpose.msra.mxu1 %v412_v29  ;;  %811 = vmatprep.mubr.msk.bf16.mxu1 %vm890_vm0, %v889_v0 }
 0x19e   : > { %821 = vmatprep.subr.bf16.mxu1 %v889_v0 }
 0x1a4   : > { %812 = vmatmul.mubr.msk.bf16.vlgmr.msra.gmra.mrb[8].mxu1 %vm135_vm1, %v405_v28 }
 0x1a5   : > { %822 = vmatpush3.bf16.xpose.msra.mxu1 %v548_v31  ;;  %823 = vmatprep.mubr.msk.bf16.mxu1 %vm890_vm0, %v889_v0 }
 0x1ac   : > { %824 = vmatmul.mubr.msk.bf16.vlgmr.msra.gmra.mrb[12].mxu1 %vm135_vm1, %v541_v32 }
 0x267   : > { %v962_v33 = vpop.f32.mrb[0].mxu1 }
 0x268   : > { %v795_v34 = vpop.f32.mrb[1].mxu1 }
 0x269   : > { %v964_v35 = vpop.f32.mrb[2].mxu1 }
 0x26a   : > { %v796_v36 = vpop.f32.mrb[3].mxu1 }
 0x26f   : > { %v312_v37 = vpop.f32.mrb[4].mxu1 }
 0x270   : > { %v801_v38 = vpop.f32.mrb[5].mxu1  ;;  %v319_v39 = vsel %vm183_vm2, %v312_v37, -inf }
 0x271   : > { %320 = vmax.xlane.f32.xlu1 %v319_v39  ;;  %v315_v40 = vpop.f32.mrb[6].mxu1 }
 0x272   : > { %v802_v41 = vpop.f32.mrb[7].mxu1  ;;  %v322_v42 = vsel %vm183_vm2, %v315_v40, -inf }
 0x273   : > { %323 = vmax.xlane.f32.xlu0 %v322_v42 }
 0x277   : > { %v448_v43 = vpop.f32.mrb[8].mxu1 }
 0x278   : > { %v813_v44 = vpop.f32.mrb[9].mxu1  ;;  %v455_v45 = vsel %vm183_vm2, %v448_v43, -inf }
 0x279   : > { %456 = vmax.xlane.f32.xlu1 %v455_v45  ;;  %v451_v46 = vpop.f32.mrb[10].mxu1 }
 0x27a   : > { %v814_v47 = vpop.f32.mrb[11].mxu1  ;;  %v458_v48 = vsel %vm183_vm2, %v451_v46, -inf }
 0x27d   : > { %459 = vmax.xlane.f32.xlu1 %v458_v48 }
 0x27f   : > { %v584_v49 = vpop.f32.mrb[12].mxu1 }
 0x280   : > { %v591_v50 = vsel %vm183_vm2, %v584_v49, -inf  ;;  %v825_v51 = vpop.f32.mrb[13].mxu1 }
 0x281   : > { %592 = vmax.xlane.f32.xlu0 %v591_v50  ;;  %v587_v52 = vpop.f32.mrb[14].mxu1 }
 0x282   : > { %v826_v53 = vpop.f32.mrb[15].mxu1  ;;  %v594_v54 = vsel %vm183_vm2, %v587_v52, -inf }
 0x28e   : > { %474 = vrot.lane.b32.xlu1 %v936_v14, %s892_s13 }
 0x297   : > { %338 = vrot.lane.b32.xlu0 %v936_v14, %s891_s12 }
 0x2b2   : > { %595 = vmax.xlane.f32.xlu1 %v594_v54 }
 0x2c3   : > { %610 = vrot.lane.b32.xlu1 %v936_v14, %s893_s14 }
 0x2fe   : > { %v321_v55 = vpop.xlane.xlu1 %320 }
 0x2ff   : > { %v325_v56 = vsub.f32 %v312_v37, %v321_v55 }
 0x300   : > { %v324_v57 = vpop.xlane.xlu0 %323 }
 0x301   : > { %v327_v58 = vmul.f32 1.442695, %v325_v56  ;;  %v326_v59 = vsub.f32 %v315_v40, %v324_v57 }
 0x303   : > { %853 = vpow2.f32 %v327_v58  ;;  %v329_v60 = vmul.f32 1.442695, %v326_v59 }
 0x305   : > { %855 = vpow2.f32 %v329_v60 }
 0x306   : > { %v457_v61 = vpop.xlane.xlu1 %456 }
 0x307   : > { %v461_v62 = vsub.f32 %v448_v43, %v457_v61 }
 0x309   : > { %v463_v63 = vmul.f32 1.442695, %v461_v62 }
 0x30a   : > { %v460_v1 = vpop.xlane.xlu1 %459 }
 0x30b   : > { %857 = vpow2.f32 %v463_v63  ;;  %v462_v2 = vsub.f32 %v451_v46, %v460_v1 }
 0x30d   : > { %v854_v3 = vpop.eup %853  ;;  %v465_v4 = vmul.f32 1.442695, %v462_v2 }
 0x30e   : > { %v593_v5 = vpop.xlane.xlu0 %592  ;;  %v331_v6 = vsel %vm183_vm2, %v854_v3, 0.0  ;;  %v475_v14 = vpop.permute.xlu1 %474 }
 0x30f   : > { %v856_v7 = vpop.eup %855  ;;  %859 = vpow2.f32 %v465_v4  ;;  %v597_v8 = vsub.f32 %v584_v49, %v593_v5  ;;  %332 = vadd.xlane.f32.xlu0 %v331_v6 }
 0x310   : > { %v334_v9 = vsel %vm183_vm2, %v856_v7, 0.0  ;;  %v337_v10 = vpack.c.bf16 %v856_v7, %v854_v3 }
 0x311   : > { %v599_v11 = vmul.f32 1.442695, %v597_v8  ;;  %335 = vadd.xlane.f32.xlu1 %v334_v9 }
 0x312   : > { %v339_v12 = vpop.permute.xlu0 %338 }
 0x313   : > { %861 = vpow2.f32 %v599_v11  ;;  %804 = vmatpush3.bf16.msra.mxu0 %v339_v12 }
 0x314   : > { %815 = vmatprep.subr.bf16.mxu0 %v889_v0 }
 0x315   : > { %v858_v13 = vpop.eup %857 }
 0x316   : > { %806 = vmatmul.mubr.msk.bf16.vlgmr.msra.gmra.mrb[4].mxu0 %vm183_vm2, %v337_v10  ;;  %v467_v15 = vsel %vm183_vm2, %v858_v13, 0.0 }
 0x317   : > { %468 = vadd.xlane.f32.xlu0 %v467_v15  ;;  %816 = vmatpush3.bf16.msra.mxu0 %v475_v14 }
 0x318   : > { %817 = vmatprep.mubr.msk.bf16.mxu0 %vm890_vm0, %v889_v0  ;;  %827 = vmatprep.subr.bf16.mxu0 %v889_v0 }
 0x319   : > { %v860_v16 = vpop.eup %859 }
 0x31a   : > { %v470_v17 = vsel %vm183_vm2, %v860_v16, 0.0  ;;  %v473_v18 = vpack.c.bf16 %v860_v16, %v858_v13 }
 0x31b   : > { %471 = vadd.xlane.f32.xlu0 %v470_v17 }
 0x31d   : > { %v862_v19 = vpop.eup %861 }
 0x31e   : > { %818 = vmatmul.mubr.msk.bf16.vlgmr.msra.gmra.mrb[8].mxu0 %vm183_vm2, %v473_v18  ;;  %v603_v20 = vsel %vm183_vm2, %v862_v19, 0.0 }
 0x31f   : > { %604 = vadd.xlane.f32.xlu1 %v603_v20  ;;  %829 = vmatprep.mubr.msk.bf16.mxu0 %vm890_vm0, %v889_v0  ;;  %v199_v0 = vsel %vm183_vm2, %v943_v23, 0.0 }
 0x323   : > { %197 = vadd.xlane.f32.xlu1 %v196_v21 }
 0x33f   : > { %v596_v24 = vpop.xlane.xlu1 %595 }
 0x340   : > { %v598_v25 = vsub.f32 %v587_v52, %v596_v24 }
 0x342   : > { %v601_v26 = vmul.f32 1.442695, %v598_v25 }
 0x343   : > { %v611_v27 = vpop.permute.xlu1 %610 }
 0x344   : > { %863 = vpow2.f32 %v601_v26  ;;  %828 = vmatpush3.bf16.msra.mxu0 %v611_v27 }
 0x34e   : > { %v864_v28 = vpop.eup %863 }
 0x34f   : > { %v606_v29 = vsel %vm183_vm2, %v864_v28, 0.0  ;;  %v609_v30 = vpack.c.bf16 %v864_v28, %v862_v19 }
 0x350   : > { %607 = vadd.xlane.f32.xlu0 %v606_v29 }
 0x351   : > { %830 = vmatmul.mubr.msk.bf16.vlgmr.msra.gmra.mrb[12].mxu0 %vm183_vm2, %v609_v30 }
 0x354   : > { %200 = vadd.xlane.f32.xlu0 %v199_v0 }
 0x39c   : > { %v333_v23 = vpop.xlane.xlu0 %332 }
 0x39e   : > { %v336_v22 = vpop.xlane.xlu1 %335 }
 0x3a4   : > { %v469_v38 = vpop.xlane.xlu0 %468 }
 0x3a8   : > { %v472_v39 = vpop.xlane.xlu0 %471 }
 0x3ac   : > { %v605_v31 = vpop.xlane.xlu1 %604 }
 0x3b0   : > { %v198_v32 = vpop.xlane.xlu1 %197 }
 0x3b1   : > { %865 = vrcp.f32 %v198_v32 }
 0x3b2   : > { %867 = vrcp.f32 %v333_v23 }
 0x3b3   : > { %869 = vrcp.f32 %v336_v22 }
 0x3bb   : > { %v866_v34 = vpop.eup %865 }
 0x3bc   : > { %v255_v36 = vmul.f32 %v866_v34, %v962_v33  ;;  %v868_v33 = vpop.eup %867 }
 0x3bd   : > { %v870_v45 = vpop.eup %869 }
 0x3be   : > { %v761_v37 = vpack.c.bf16 %v255_v36, %v255_v36 }
 0x3c0   : > { %266 = vst.msk [vmem:[%s1002_s18] sm:$0xf] %vm265_vm3, %v761_v37 }
 0x3dd   : > { %v608_v40 = vpop.xlane.xlu0 %607 }
 0x3e1   : > { %v201_v41 = vpop.xlane.xlu0 %200 }
 0x3e2   : > { %871 = vrcp.f32 %v201_v41 }
 0x3e3   : > { %873 = vrcp.f32 %v469_v38 }
 0x3e4   : > { %875 = vrcp.f32 %v472_v39 }
 0x3e5   : > { %877 = vrcp.f32 %v605_v31 }
 0x3e6   : > { %879 = vrcp.f32 %v608_v40 }
 0x3e9   : > { %v378_v42 = vpop.f32.mrb[4].mxu0 }
 0x3ea   : > { %v387_v43 = vmul.f32 %v868_v33, %v378_v42  ;;  %v807_v44 = vpop.f32.mrb[5].mxu0 }
 0x3eb   : > { %v381_v46 = vpop.f32.mrb[6].mxu0 }
 0x3ec   : > { %v872_v47 = vpop.eup %871  ;;  %v763_v48 = vpack.c.bf16 %v387_v43, %v387_v43  ;;  %v388_v49 = vmul.f32 %v870_v45, %v381_v46  ;;  %v808_v50 = vpop.f32.mrb[7].mxu0 }
 0x3ed   : > { %v256_v51 = vmul.f32 %v872_v47, %v964_v35  ;;  %v874_v54 = vpop.eup %873 }
 0x3ee   : > { %v764_v52 = vpack.c.bf16 %v388_v49, %v388_v49  ;;  %395 = vrot.lane.b32.xlu1 %v763_v48, %s893_s14  ;;  %v876_v58 = vpop.eup %875 }
 0x3ef   : > { %v762_v53 = vpack.c.bf16 %v256_v51, %v256_v51  ;;  %v878_v63 = vpop.eup %877 }
 0x3f0   : > { %397 = vrot.lane.b32.xlu0 %v764_v52, %s893_s14  ;;  %v880_v4 = vpop.eup %879 }
 0x3f1   : > { %v514_v55 = vpop.f32.mrb[8].mxu0  ;;  %267 = vst.msk [vmem:[%s1002_s18 + $0x4] sm:$0xf] %vm265_vm3, %v762_v53 }
 0x3f2   : > { %v523_v56 = vmul.f32 %v874_v54, %v514_v55  ;;  %v819_v57 = vpop.f32.mrb[9].mxu0 }
 0x3f3   : > { %v517_v59 = vpop.f32.mrb[10].mxu0 }
 0x3f4   : > { %v765_v60 = vpack.c.bf16 %v523_v56, %v523_v56  ;;  %v524_v61 = vmul.f32 %v876_v58, %v517_v59  ;;  %v820_v62 = vpop.f32.mrb[11].mxu0 }
 0x3f6   : > { %531 = vrot.lane.b32.xlu1 %v765_v60, %s892_s13  ;;  %v766_v35 = vpack.c.bf16 %v524_v61, %v524_v61 }
 0x3fa   : > { %533 = vrot.lane.b32.xlu1 %v766_v35, %s892_s13 }
 0x424   : > { %v650_v1 = vpop.f32.mrb[12].mxu0 }
 0x425   : > { %v659_v2 = vmul.f32 %v878_v63, %v650_v1  ;;  %v831_v3 = vpop.f32.mrb[13].mxu0 }
 0x426   : > { %v653_v5 = vpop.f32.mrb[14].mxu0 }
 0x427   : > { %v767_v6 = vpack.c.bf16 %v659_v2, %v659_v2  ;;  %v660_v7 = vmul.f32 %v880_v4, %v653_v5  ;;  %v832_v8 = vpop.f32.mrb[15].mxu0 }
 0x429   : > { %v768_v9 = vpack.c.bf16 %v660_v7, %v660_v7  ;;  %667 = vrot.lane.b32.xlu0 %v767_v6, %s891_s12 }
 0x42b   : > { %669 = vrot.lane.b32.xlu1 %v768_v9, %s891_s12 }
 0x460   : > { %v396_v10 = vpop.permute.xlu1 %395 }
 0x461   : > { %402 = vst.msk [vmem:[%s1002_s18] sm:$0xf] %vm401_vm4, %v396_v10 }
 0x462   : > { %v398_v11 = vpop.permute.xlu0 %397 }
 0x463   : > { %403 = vst.msk [vmem:[%s1002_s18 + $0x4] sm:$0xf] %vm401_vm4, %v398_v11 }
 0x468   : > { %v532_v12 = vpop.permute.xlu1 %531 }
 0x469   : > { %538 = vst.msk [vmem:[%s1002_s18] sm:$0xf] %vm537_vm5, %v532_v12 }
 0x46c   : > { %v534_v13 = vpop.permute.xlu1 %533 }
 0x46d   : > { %539 = vst.msk [vmem:[%s1002_s18 + $0x4] sm:$0xf] %vm537_vm5, %v534_v13 }
 0x49b   : > { %v668_v14 = vpop.permute.xlu0 %667 }
 0x49c   : > { %674 = vst.msk [vmem:[%s1002_s18] sm:$0xf] %vm673_vm6, %v668_v14 }
 0x49d   : > { %v670_v15 = vpop.permute.xlu1 %669 }
 0x49e   : > { %675 = vst.msk [vmem:[%s1002_s18 + $0x4] sm:$0xf] %vm673_vm6, %v670_v15 }
 0x49f PF: > { %s11_s6 = sadd.s32 1, %s887_s6  }
 0x4a0   : > { %p8_p4 = scmp.ge.s32.totalorder %s11_s6, 4  }
 0x4a2   :  { %10 = sbr.rel (!%p8_p4) target bundleno = 1 (0x1), region = 54 }

// kernel: encoder_forward.16
= control target key start
LH: loop header
LB: loop body
LE: loop exit
PB: predicated region body
PF: predicated region fallthrough
CT: control target
= control target key end

     0   :  { %s408_s1 = inlined_call_operand.vmem [shape: f32[256,128], index: 1, kind: input, shape index: {}]   ;;  %s409_s0 = inlined_call_operand.vmem [shape: bf16[32,256], index: 0, kind: input, shape index: {}]   ;;  %s410_s2 = inlined_call_operand.vmem [shape: f32[1,128], index: 2, kind: input, shape index: {}]   ;;  %s411_s3 = inlined_call_operand.vmem [shape: f32[32,128], index: 3, kind: input, shape index: {}]   ;;  %s412_s4 = inlined_call_operand.vmem [shape: f32[32,128], index: 4, kind: output, shape index: {}]  }
   0x1   :  { %v50_v0 = vld [vmem:[%s408_s1 + $0x80] sm:$0xff]  ;;  %v51_v1 = vld [vmem:[%s408_s1 + $0x88] sm:$0xff]  ;;  %v52_v5 = vld [vmem:[%s408_s1 + $0x90] sm:$0xff] }
   0x2   :  { %v34_v2 = vld [vmem:[%s408_s1] sm:$0xff]  ;;  %v74_v3 = vpack.c.bf16 %v51_v1, %v50_v0  ;;  %v35_v4 = vld [vmem:[%s408_s1 + $0x8] sm:$0xff]  ;;  %v53_v6 = vld [vmem:[%s408_s1 + $0x98] sm:$0xff] }
   0x3   :  { %v66_v7 = vpack.c.bf16 %v35_v4, %v34_v2  ;;  %v75_v8 = vpack.c.bf16 %v53_v6, %v52_v5  ;;  %v36_v9 = vld [vmem:[%s408_s1 + $0x10] sm:$0xff]  ;;  %v37_v10 = vld [vmem:[%s408_s1 + $0x18] sm:$0xff]  ;;  %v54_v11 = vld [vmem:[%s408_s1 + $0xa0] sm:$0xff] }
   0x4   :  { %198 = vmatprep.subr.bf16.mxu0 %v74_v3  ;;  %226 = vmatprep.subr.bf16.mxu1 %v74_v3  ;;  %v55_v12 = vld [vmem:[%s408_s1 + $0xa8] sm:$0xff]  ;;  %v67_v13 = vpack.c.bf16 %v37_v10, %v36_v9  ;;  %v38_v15 = vld [vmem:[%s408_s1 + $0x20] sm:$0xff]  ;;  %v56_v17 = vld [vmem:[%s408_s1 + $0xb0] sm:$0xff] }
   0x5   :  { %199 = vmatpush3.bf16.msra.mxu0 %v66_v7  ;;  %234 = vmatpush3.bf16.msra.mxu1 %v66_v7  ;;  %v76_v14 = vpack.c.bf16 %v55_v12, %v54_v11  ;;  %v39_v16 = vld [vmem:[%s408_s1 + $0x28] sm:$0xff]  ;;  %v57_v18 = vld [vmem:[%s408_s1 + $0xb8] sm:$0xff]  ;;  %v40_v21 = vld [vmem:[%s408_s1 + $0x30] sm:$0xff] }
   0x6   :  { %200 = vmatprep.subr.bf16.mxu0 %v75_v8  ;;  %227 = vmatprep.subr.bf16.mxu1 %v75_v8  ;;  %v68_v19 = vpack.c.bf16 %v39_v16, %v38_v15  ;;  %v77_v20 = vpack.c.bf16 %v57_v18, %v56_v17  ;;  %v41_v22 = vld [vmem:[%s408_s1 + $0x38] sm:$0xff]  ;;  %v58_v23 = vld [vmem:[%s408_s1 + $0xc0] sm:$0xff]  ;;  %v59_v24 = vld [vmem:[%s408_s1 + $0xc8] sm:$0xff] }
   0x7   :  { %v244_v25 = vld [vmem:[%s409_s0 + $0x4] ss:$8 sps:$4 sm:$0xff]   ;;  %v69_v26 = vpack.c.bf16 %v41_v22, %v40_v21  ;;  %v78_v27 = vpack.c.bf16 %v59_v24, %v58_v23  ;;  %v247_v30 = vld [vmem:[%s409_s0 + $0x14] ss:$8 sps:$4 sm:$0xff]   ;;  %v242_v50 = vld [vmem:[%s409_s0] ss:$8 sps:$4 sm:$0xff]  }
   0x8   :  { %v42_v28 = vld [vmem:[%s408_s1 + $0x40] sm:$0xff]  ;;  %v43_v29 = vld [vmem:[%s408_s1 + $0x48] sm:$0xff]  ;;  %v60_v31 = vld [vmem:[%s408_s1 + $0xd0] sm:$0xff]  ;;  %134 = vmatprep.mubr.bf16.mxu0 %v244_v25  ;;  %142 = vmatprep.mubr.bf16.mxu1 %v247_v30 }
   0x9   :  { %201 = vmatpush3.bf16.msra.mxu0 %v67_v13  ;;  %235 = vmatpush3.bf16.msra.mxu1 %v67_v13  ;;  %v61_v32 = vld [vmem:[%s408_s1 + $0xd8] sm:$0xff]  ;;  %v70_v33 = vpack.c.bf16 %v43_v29, %v42_v28  ;;  %v44_v35 = vld [vmem:[%s408_s1 + $0x50] sm:$0xff]  ;;  %v62_v37 = vld [vmem:[%s408_s1 + $0xe0] sm:$0xff] }
   0xa   :  { %202 = vmatprep.subr.bf16.mxu0 %v76_v14  ;;  %228 = vmatprep.subr.bf16.mxu1 %v76_v14  ;;  %v79_v34 = vpack.c.bf16 %v61_v32, %v60_v31  ;;  %v45_v36 = vld [vmem:[%s408_s1 + $0x58] sm:$0xff]  ;;  %v63_v38 = vld [vmem:[%s408_s1 + $0xe8] sm:$0xff]  ;;  %v46_v41 = vld [vmem:[%s408_s1 + $0x60] sm:$0xff] }
   0xb   :  { %v71_v39 = vpack.c.bf16 %v45_v36, %v44_v35  ;;  %v80_v40 = vpack.c.bf16 %v63_v38, %v62_v37  ;;  %v47_v42 = vld [vmem:[%s408_s1 + $0x68] sm:$0xff]  ;;  %v64_v43 = vld [vmem:[%s408_s1 + $0xf0] sm:$0xff]  ;;  %v65_v44 = vld [vmem:[%s408_s1 + $0xf8] sm:$0xff] }
   0xc   :  { %v72_v45 = vpack.c.bf16 %v47_v42, %v46_v41  ;;  %v81_v46 = vpack.c.bf16 %v65_v44, %v64_v43  ;;  %v48_v47 = vld [vmem:[%s408_s1 + $0x70] sm:$0xff]  ;;  %v49_v48 = vld [vmem:[%s408_s1 + $0x78] sm:$0xff]  ;;  %v197_v55 = vld [vmem:[%s410_s2] ss:$0 sm:$0xff] }
   0xd   :  { %203 = vmatpush3.bf16.msra.mxu0 %v68_v19  ;;  %236 = vmatpush3.bf16.msra.mxu1 %v68_v19  ;;  %v73_v49 = vpack.c.bf16 %v49_v48, %v48_v47  ;;  %v245_v51 = vld [vmem:[%s409_s0 + $0x10] ss:$8 sps:$4 sm:$0xff]   ;;  %v177_v61 = vld [vmem:[%s411_s3] sm:$0xff]  ;;  %v178_v5 = vld [vmem:[%s411_s3 + $0x8] sm:$0xff] }
   0xe   :  { %204 = vmatprep.subr.bf16.mxu0 %v77_v20  ;;  %229 = vmatprep.subr.bf16.mxu1 %v77_v20  ;;  %v179_v62 = vld [vmem:[%s411_s3 + $0x10] sm:$0xff]  ;;  %v180_v6 = vld [vmem:[%s411_s3 + $0x18] sm:$0xff] }
  0x11   :  { %205 = vmatpush3.bf16.msra.mxu0 %v69_v26  ;;  %237 = vmatpush3.bf16.msra.mxu1 %v69_v26 }
  0x12   :  { %206 = vmatprep.subr.bf16.mxu0 %v78_v27  ;;  %230 = vmatprep.subr.bf16.mxu1 %v78_v27 }
  0x15   :  { %207 = vmatpush3.bf16.msra.mxu0 %v70_v33  ;;  %238 = vmatpush3.bf16.msra.mxu1 %v70_v33 }
  0x16   :  { %208 = vmatprep.subr.bf16.mxu0 %v79_v34  ;;  %231 = vmatprep.subr.bf16.mxu1 %v79_v34 }
  0x19   :  { %209 = vmatpush3.bf16.msra.mxu0 %v71_v39  ;;  %239 = vmatpush3.bf16.msra.mxu1 %v71_v39 }
  0x1a   :  { %210 = vmatprep.subr.bf16.mxu0 %v80_v40  ;;  %232 = vmatprep.subr.bf16.mxu1 %v80_v40 }
  0x1d   :  { %211 = vmatpush3.bf16.msra.mxu0 %v72_v45  ;;  %240 = vmatpush3.bf16.msra.mxu1 %v72_v45 }
  0x1e   :  { %212 = vmatprep.subr.bf16.mxu0 %v81_v46  ;;  %233 = vmatprep.subr.bf16.mxu1 %v81_v46 }
  0x21   :  { %213 = vmatpush3.bf16.msra.mxu0 %v73_v49  ;;  %241 = vmatpush3.bf16.msra.mxu1 %v73_v49 }
  0x24   :  { %135 = vmatmul.mubr.bf16.vlgmr.msra.gmra.mrb[0].mxu0 %v242_v50  ;;  %143 = vmatmul.mubr.bf16.vlgmr.msra.gmra.mrb[0].mxu1 %v245_v51 }
  0xf7   :  { %v214_v52 = vpop.f32.mrb[0].mxu0  ;;  %v220_v53 = vpop.f32.mrb[0].mxu1 }
  0xf8   :  { %v215_v54 = vpop.f32.mrb[1].mxu0  ;;  %v221_v56 = vpop.f32.mrb[1].mxu1 }
  0xf9   :  { %v216_v57 = vadd.f32 %v215_v54, %v214_v52  ;;  %v222_v58 = vadd.f32 %v221_v56, %v220_v53  ;;  %v217_v59 = vpop.f32.mrb[2].mxu0  ;;  %v223_v60 = vpop.f32.mrb[2].mxu1 }
  0xfa   :  { %v218_v63 = vpop.f32.mrb[3].mxu0  ;;  %v224_v0 = vpop.f32.mrb[3].mxu1 }
  0xfb   :  { %v173_v1 = vadd.f32 %v216_v57, %v197_v55  ;;  %v175_v2 = vadd.f32 %v222_v58, %v197_v55  ;;  %v219_v3 = vadd.f32 %v218_v63, %v217_v59  ;;  %v225_v4 = vadd.f32 %v224_v0, %v223_v60 }
  0xfd   :  { %v181_v7 = vadd.f32 %v177_v61, %v173_v1  ;;  %v183_v8 = vadd.f32 %v179_v62, %v175_v2  ;;  %v174_v9 = vadd.f32 %v219_v3, %v197_v55  ;;  %v176_v10 = vadd.f32 %v225_v4, %v197_v55 }
  0xff   :  { %185 = vst [vmem:[%s412_s4] sm:$0xff] %v181_v7  ;;  %187 = vst [vmem:[%s412_s4 + $0x10] sm:$0xff] %v183_v8  ;;  %v182_v11 = vadd.f32 %v178_v5, %v174_v9  ;;  %v184_v12 = vadd.f32 %v180_v6, %v176_v10 }
 0x101   :  { %186 = vst [vmem:[%s412_s4 + $0x8] sm:$0xff] %v182_v11  ;;  %188 = vst [vmem:[%s412_s4 + $0x18] sm:$0xff] %v184_v12 }

// kernel: encoder_forward.15
= control target key start
LH: loop header
LB: loop body
LE: loop exit
PB: predicated region body
PF: predicated region fallthrough
CT: control target
= control target key end

     0   :  { %v290_v61 = vmov 0   ;;  %s470_s0 = inlined_call_operand.vmem [shape: f32[32,128], index: 0, kind: input, shape index: {}]   ;;  %s471_s3 = inlined_call_operand.vmem [shape: f32[128,256], index: 3, kind: input, shape index: {}]   ;;  %s472_s1 = inlined_call_operand.vmem [shape: f32[1,128], index: 1, kind: input, shape index: {}]   ;;  %s473_s2 = inlined_call_operand.vmem [shape: f32[1,128], index: 2, kind: input, shape index: {}]   ;;  %s474_s4 = inlined_call_operand.vmem [shape: f32[1,256], index: 4, kind: input, shape index: {}]   ;;  %s475_s5 = inlined_call_operand.vmem [shape: bf16[32,256], index: 5, kind: output, shape index: {}]  }
   0x1   :  { %v25_v0 = vld [vmem:[%s470_s0] sm:$0xff]  ;;  %v27_v1 = vld [vmem:[%s470_s0 + $0x10] sm:$0xff]  ;;  %v26_v2 = vld [vmem:[%s470_s0 + $0x8] sm:$0xff]  ;;  %194 = vmatprep.mubr.bf16.mxu0 %v290_v61  ;;  %204 = vmatprep.mubr.bf16.mxu1 %v290_v61 }
   0x2   :  { %29 = vadd.xlane.f32.xlu0 %v25_v0  ;;  %33 = vadd.xlane.f32.xlu1 %v27_v1  ;;  %v28_v3 = vld [vmem:[%s470_s0 + $0x18] sm:$0xff]  ;;  %v103_v4 = vld [vmem:[%s471_s3 + $0x8] sm:$0xff]  ;;  %v102_v6 = vld [vmem:[%s471_s3] sm:$0xff] }
   0x3   :  { %v105_v5 = vld [vmem:[%s471_s3 + $0x18] sm:$0xff]  ;;  %v104_v8 = vld [vmem:[%s471_s3 + $0x10] sm:$0xff]  ;;  %v107_v9 = vld [vmem:[%s471_s3 + $0x28] sm:$0xff] }
   0x4   :  { %v135_v7 = vpack.c.bf16 %v105_v5, %v103_v4  ;;  %v109_v10 = vld [vmem:[%s471_s3 + $0x38] sm:$0xff]  ;;  %v134_v11 = vpack.c.bf16 %v104_v8, %v102_v6  ;;  %v106_v29 = vld [vmem:[%s471_s3 + $0x20] sm:$0xff]  ;;  %v108_v30 = vld [vmem:[%s471_s3 + $0x30] sm:$0xff] }
   0x5   :  { %v137_v12 = vpack.c.bf16 %v109_v10, %v107_v9  ;;  %v136_v31 = vpack.c.bf16 %v108_v30, %v106_v29  ;;  %v111_v32 = vld [vmem:[%s471_s3 + $0x48] sm:$0xff]  ;;  %v113_v33 = vld [vmem:[%s471_s3 + $0x58] sm:$0xff]  ;;  %v110_v35 = vld [vmem:[%s471_s3 + $0x40] sm:$0xff] }
   0x6   :  { %31 = vadd.xlane.f32.xlu0 %v26_v2  ;;  %35 = vadd.xlane.f32.xlu1 %v28_v3  ;;  %v139_v34 = vpack.c.bf16 %v113_v33, %v111_v32  ;;  %v112_v36 = vld [vmem:[%s471_s3 + $0x50] sm:$0xff]  ;;  %v115_v38 = vld [vmem:[%s471_s3 + $0x68] sm:$0xff]  ;;  %v117_v39 = vld [vmem:[%s471_s3 + $0x78] sm:$0xff] }
   0x7   :  { %162 = vmatprep.subr.bf16.mxu0 %v135_v7  ;;  %265 = vmatprep.subr.bf16.mxu1 %v135_v7  ;;  %v138_v37 = vpack.c.bf16 %v112_v36, %v110_v35  ;;  %v141_v40 = vpack.c.bf16 %v117_v39, %v115_v38  ;;  %v114_v41 = vld [vmem:[%s471_s3 + $0x60] sm:$0xff]  ;;  %v116_v42 = vld [vmem:[%s471_s3 + $0x70] sm:$0xff]  ;;  %v119_v44 = vld [vmem:[%s471_s3 + $0x88] sm:$0xff]  ;;  %v152_v39 = vlaneseq }
   0x8   :  { %163 = vmatpush1.bf16.msra.mxu0 %v134_v11  ;;  %273 = vmatpush1.bf16.msra.mxu1 %v134_v11  ;;  %v140_v43 = vpack.c.bf16 %v116_v42, %v114_v41  ;;  %v121_v45 = vld [vmem:[%s471_s3 + $0x98] sm:$0xff]  ;;  %v118_v47 = vld [vmem:[%s471_s3 + $0x80] sm:$0xff]  ;;  %v120_v48 = vld [vmem:[%s471_s3 + $0x90] sm:$0xff] }
   0x9   :  { %164 = vmatprep.subr.bf16.mxu0 %v137_v12  ;;  %266 = vmatprep.subr.bf16.mxu1 %v137_v12  ;;  %v143_v46 = vpack.c.bf16 %v121_v45, %v119_v44  ;;  %v142_v49 = vpack.c.bf16 %v120_v48, %v118_v47  ;;  %v123_v50 = vld [vmem:[%s471_s3 + $0xa8] sm:$0xff]  ;;  %v125_v51 = vld [vmem:[%s471_s3 + $0xb8] sm:$0xff]  ;;  %v122_v52 = vld [vmem:[%s471_s3 + $0xa0] sm:$0xff] }
   0xa   :  { %v145_v53 = vpack.c.bf16 %v125_v51, %v123_v50  ;;  %v124_v54 = vld [vmem:[%s471_s3 + $0xb0] sm:$0xff]  ;;  %v127_v55 = vld [vmem:[%s471_s3 + $0xc8] sm:$0xff]  ;;  %v129_v56 = vld [vmem:[%s471_s3 + $0xd8] sm:$0xff] }
   0xb   :  { %v144_v57 = vpack.c.bf16 %v124_v54, %v122_v52  ;;  %v147_v58 = vpack.c.bf16 %v129_v56, %v127_v55  ;;  %v126_v59 = vld [vmem:[%s471_s3 + $0xc0] sm:$0xff]  ;;  %v128_v60 = vld [vmem:[%s471_s3 + $0xd0] sm:$0xff]  ;;  %v131_v62 = vld [vmem:[%s471_s3 + $0xe8] sm:$0xff] }
   0xc   :  { %165 = vmatpush1.bf16.msra.mxu0 %v136_v31  ;;  %274 = vmatpush1.bf16.msra.mxu1 %v136_v31  ;;  %v133_v63 = vld [vmem:[%s471_s3 + $0xf8] sm:$0xff] }
   0xd   :  { %166 = vmatprep.subr.bf16.mxu0 %v139_v34  ;;  %267 = vmatprep.subr.bf16.mxu1 %v139_v34 }
  0x10   :  { %167 = vmatpush1.bf16.msra.mxu0 %v138_v37  ;;  %275 = vmatpush1.bf16.msra.mxu1 %v138_v37 }
  0x11   :  { %168 = vmatprep.subr.bf16.mxu0 %v141_v40  ;;  %268 = vmatprep.subr.bf16.mxu1 %v141_v40  ;;  %v153_v40 = vshrl.u32 %v152_v39, 7 }
  0x13   :  { %v154_v41 = vsub.s32 0, %v153_v40  ;;  %v158_v42 = vsub.s32 1, %v153_v40 }
  0x14   :  { %169 = vmatpush1.bf16.msra.mxu0 %v140_v43  ;;  %276 = vmatpush1.bf16.msra.mxu1 %v140_v43 }
  0x15   :  { %170 = vmatprep.subr.bf16.mxu0 %v143_v46  ;;  %269 = vmatprep.subr.bf16.mxu1 %v143_v46 }
  0x18   :  { %171 = vmatpush1.bf16.msra.mxu0 %v142_v49  ;;  %277 = vmatpush1.bf16.msra.mxu1 %v142_v49 }
  0x19   :  { %172 = vmatprep.subr.bf16.mxu0 %v145_v53  ;;  %270 = vmatprep.subr.bf16.mxu1 %v145_v53 }
  0x1c   :  { %173 = vmatpush1.bf16.msra.mxu0 %v144_v57  ;;  %278 = vmatpush1.bf16.msra.mxu1 %v144_v57 }
  0x1d   :  { %174 = vmatprep.subr.bf16.mxu0 %v147_v58  ;;  %271 = vmatprep.subr.bf16.mxu1 %v147_v58 }
  0x8f   :  { %v30_v13 = vpop.xlane.xlu0 %29  ;;  %v34_v14 = vpop.xlane.xlu1 %33 }
  0x90   :  { %v38_v15 = vmul.f32 0.0078125, %v30_v13  ;;  %v40_v16 = vmul.f32 0.0078125, %v34_v14 }
  0x92   :  { %v351_v17 = vsub.f32 %v25_v0, %v38_v15  ;;  %v353_v18 = vsub.f32 %v27_v1, %v40_v16  ;;  %v146_v0 = vpack.c.bf16 %v128_v60, %v126_v59  ;;  %v149_v1 = vpack.c.bf16 %v133_v63, %v131_v62 }
  0x93   :  { %v32_v19 = vpop.xlane.xlu0 %31  ;;  %v36_v20 = vpop.xlane.xlu1 %35 }
  0x94   :  { %v39_v21 = vmul.f32 0.0078125, %v32_v19  ;;  %v46_v22 = vmul.f32 %v351_v17, %v351_v17  ;;  %v41_v23 = vmul.f32 0.0078125, %v36_v20  ;;  %v48_v26 = vmul.f32 %v353_v18, %v353_v18  ;;  %175 = vmatpush1.bf16.msra.mxu0 %v146_v0  ;;  %279 = vmatpush1.bf16.msra.mxu1 %v146_v0 }
  0x95   :  { %176 = vmatprep.subr.bf16.mxu0 %v149_v1  ;;  %272 = vmatprep.subr.bf16.mxu1 %v149_v1 }
  0x96   :  { %v357_v24 = vsub.f32 %v26_v2, %v39_v21  ;;  %50 = vadd.xlane.f32.xlu0 %v46_v22  ;;  %v359_v25 = vsub.f32 %v28_v3, %v41_v23  ;;  %v130_v2 = vld [vmem:[%s471_s3 + $0xe0] sm:$0xff]  ;;  %v132_v3 = vld [vmem:[%s471_s3 + $0xf0] sm:$0xff] }
  0x97   :  { %v148_v4 = vpack.c.bf16 %v132_v3, %v130_v2  ;;  %v255_v21 = vld [vmem:[%s472_s1] ss:$0 sm:$0xff] }
  0x98   :  { %v47_v27 = vmul.f32 %v357_v24, %v357_v24  ;;  %v49_v28 = vmul.f32 %v359_v25, %v359_v25 }
  0x99   :  { %177 = vmatpush1.bf16.msra.mxu0 %v148_v4  ;;  %280 = vmatpush1.bf16.msra.mxu1 %v148_v4 }
  0x9a   :  { %54 = vadd.xlane.f32.xlu0 %v48_v26  ;;  %52 = vadd.xlane.f32.xlu1 %v47_v27 }
  0x9e   :  { %56 = vadd.xlane.f32.xlu1 %v49_v28  ;;  %v256_v28 = vld [vmem:[%s473_s2] ss:$0 sm:$0xff] }
 0x123   :  { %v51_v5 = vpop.xlane.xlu0 %50 }
 0x124   :  { %v58_v6 = vmul.f32 0.0078125, %v51_v5 }
 0x126   :  { %v62_v7 = vadd.f32 1e-05, %v58_v6 }
 0x127   :  { %v53_v8 = vpop.xlane.xlu1 %52  ;;  %v55_v9 = vpop.xlane.xlu0 %54 }
 0x128   :  { %282 = vrsqrt.f32 %v62_v7  ;;  %v59_v10 = vmul.f32 0.0078125, %v53_v8  ;;  %v60_v11 = vmul.f32 0.0078125, %v55_v9 }
 0x12a   :  { %v63_v12 = vadd.f32 1e-05, %v59_v10  ;;  %v64_v13 = vadd.f32 1e-05, %v60_v11 }
 0x12b   :  { %v57_v14 = vpop.xlane.xlu1 %56 }
 0x12c   :  { %284 = vrsqrt.f32 %v63_v12  ;;  %v61_v15 = vmul.f32 0.0078125, %v57_v14 }
 0x12d   :  { %286 = vrsqrt.f32 %v64_v13 }
 0x12e   :  { %v65_v16 = vadd.f32 1e-05, %v61_v15 }
 0x130   :  { %288 = vrsqrt.f32 %v65_v16 }
 0x132   :  { %v283_v19 = vpop.eup %282 }
 0x133   :  { %v70_v20 = vmul.f32 %v283_v19, %v351_v17 }
 0x135   :  { %v81_v27 = vmul.f32 %v255_v21, %v70_v20 }
 0x136   :  { %v285_v22 = vpop.eup %284 }
 0x137   :  { %v287_v23 = vpop.eup %286  ;;  %v71_v26 = vmul.f32 %v285_v22, %v357_v24  ;;  %v92_v32 = vadd.f32 %v256_v28, %v81_v27 }
 0x138   :  { %v72_v29 = vmul.f32 %v287_v23, %v353_v18  ;;  %v150_v18 = vld [vmem:[%s474_s4] sm:$0x3] }
 0x139   :  { %v82_v30 = vmul.f32 %v255_v21, %v71_v26  ;;  %v155_v43 = vrot.slane %v150_v18, %v154_v41  ;;  %v159_v44 = vrot.slane %v150_v18, %v158_v42 }
 0x13a   :  { %v289_v31 = vpop.eup %288  ;;  %v83_v34 = vmul.f32 %v255_v21, %v72_v29 }
 0x13b   :  { %v93_v33 = vadd.f32 %v256_v28, %v82_v30  ;;  %v73_v17 = vmul.f32 %v289_v31, %v359_v25 }
 0x13c   :  { %v94_v37 = vadd.f32 %v256_v28, %v83_v34 }
 0x13d   :  { %v96_v35 = vpack.c.bf16 %v93_v33, %v92_v32  ;;  %v84_v36 = vmul.f32 %v255_v21, %v73_v17 }
 0x13f   :  { %195 = vmatmul.mubr.bf16.vlgmr.msra.gmra.mrb[0].mxu0 %v96_v35  ;;  %v95_v38 = vadd.f32 %v256_v28, %v84_v36 }
 0x141   :  { %v97_v24 = vpack.c.bf16 %v95_v38, %v94_v37 }
 0x143   :  { %205 = vmatmul.mubr.bf16.vlgmr.msra.gmra.mrb[0].mxu1 %v97_v24 }
 0x212   :  { %v196_v45 = vpop.f32.mrb[0].mxu0 }
 0x213   :  { %v197_v25 = vadd.f32 %v196_v45, %v155_v43  ;;  %v198_v46 = vpop.f32.mrb[1].mxu0 }
 0x214   :  { %v199_v47 = vadd.f32 %v198_v46, %v159_v44  ;;  %v200_v48 = vpop.f32.mrb[2].mxu0 }
 0x215   :  { %v215_v49 = vmax.f32 %v197_v25, 0.0  ;;  %v201_v50 = vadd.f32 %v200_v48, %v155_v43  ;;  %v202_v51 = vpop.f32.mrb[3].mxu0 }
 0x216   :  { %v216_v52 = vmax.f32 %v199_v47, 0.0  ;;  %v203_v53 = vadd.f32 %v202_v51, %v159_v44  ;;  %v206_v54 = vpop.f32.mrb[0].mxu1 }
 0x217   :  { %v217_v55 = vmax.f32 %v201_v50, 0.0  ;;  %v207_v56 = vadd.f32 %v206_v54, %v155_v43  ;;  %v208_v57 = vpop.f32.mrb[1].mxu1 }
 0x218   :  { %v261_v58 = vpack.c.bf16 %v216_v52, %v215_v49  ;;  %v218_v59 = vmax.f32 %v203_v53, 0.0  ;;  %v209_v60 = vadd.f32 %v208_v57, %v159_v44  ;;  %v210_v61 = vpop.f32.mrb[2].mxu1 }
 0x219   :  { %v219_v62 = vmax.f32 %v207_v56, 0.0  ;;  %v211_v63 = vadd.f32 %v210_v61, %v155_v43  ;;  %v212_v0 = vpop.f32.mrb[3].mxu1 }
 0x21a   :  { %247 = vst [vmem:[%s475_s5] sm:$0xff] %v261_v58  ;;  %v262_v1 = vpack.c.bf16 %v218_v59, %v217_v55  ;;  %v220_v2 = vmax.f32 %v209_v60, 0.0  ;;  %v213_v3 = vadd.f32 %v212_v0, %v159_v44 }
 0x21b   :  { %v221_v4 = vmax.f32 %v211_v63, 0.0 }
 0x21c   :  { %248 = vst [vmem:[%s475_s5 + $0x8] sm:$0xff] %v262_v1  ;;  %v263_v5 = vpack.c.bf16 %v220_v2, %v219_v62  ;;  %v222_v6 = vmax.f32 %v213_v3, 0.0 }
 0x21e   :  { %249 = vst [vmem:[%s475_s5 + $0x10] sm:$0xff] %v263_v5  ;;  %v264_v7 = vpack.c.bf16 %v222_v6, %v221_v4 }
 0x220   :  { %250 = vst [vmem:[%s475_s5 + $0x18] sm:$0xff] %v264_v7 }

// kernel: encoder_forward.14
= control target key start
LH: loop header
LB: loop body
LE: loop exit
PB: predicated region body
PF: predicated region fallthrough
CT: control target
= control target key end

     0   :  { %s302_s1 = inlined_call_operand.vmem [shape: f32[128,128], index: 1, kind: input, shape index: {}]   ;;  %s303_s0 = inlined_call_operand.vmem [shape: bf16[32,128], index: 0, kind: input, shape index: {}]   ;;  %s304_s2 = inlined_call_operand.vmem [shape: f32[1,128], index: 2, kind: input, shape index: {}]   ;;  %s305_s3 = inlined_call_operand.vmem [shape: f32[32,128], index: 3, kind: input, shape index: {}]   ;;  %s306_s4 = inlined_call_operand.vmem [shape: f32[32,128], index: 4, kind: output, shape index: {}]  }
   0x1   :  { %v34_v0 = vld [vmem:[%s302_s1] sm:$0xff]  ;;  %v35_v1 = vld [vmem:[%s302_s1 + $0x8] sm:$0xff]  ;;  %v36_v2 = vld [vmem:[%s302_s1 + $0x10] sm:$0xff] }
   0x2   :  { %v50_v3 = vpack.c.bf16 %v35_v1, %v34_v0  ;;  %v37_v4 = vld [vmem:[%s302_s1 + $0x18] sm:$0xff]  ;;  %v38_v6 = vld [vmem:[%s302_s1 + $0x20] sm:$0xff]  ;;  %v39_v7 = vld [vmem:[%s302_s1 + $0x28] sm:$0xff] }
   0x3   :  { %v51_v5 = vpack.c.bf16 %v37_v4, %v36_v2  ;;  %v40_v8 = vld [vmem:[%s302_s1 + $0x30] sm:$0xff]  ;;  %v52_v9 = vpack.c.bf16 %v39_v7, %v38_v6  ;;  %v41_v10 = vld [vmem:[%s302_s1 + $0x38] sm:$0xff]  ;;  %v194_v11 = vld [vmem:[%s303_s0] sm:$0xff]  }
   0x4   :  { %174 = vmatprep.subr.bf16.mxu0 %v50_v3  ;;  %190 = vmatprep.mubr.bf16.mxu0 %v194_v11  ;;  %v53_v12 = vpack.c.bf16 %v41_v10, %v40_v8  ;;  %v42_v13 = vld [vmem:[%s302_s1 + $0x40] sm:$0xff]  ;;  %v43_v14 = vld [vmem:[%s302_s1 + $0x48] sm:$0xff]  ;;  %v44_v16 = vld [vmem:[%s302_s1 + $0x50] sm:$0xff] }
   0x5   :  { %175 = vmatpush3.bf16.msra.mxu0 %v50_v3  ;;  %v54_v15 = vpack.c.bf16 %v43_v14, %v42_v13  ;;  %v45_v17 = vld [vmem:[%s302_s1 + $0x58] sm:$0xff]  ;;  %v46_v19 = vld [vmem:[%s302_s1 + $0x60] sm:$0xff]  ;;  %v47_v20 = vld [vmem:[%s302_s1 + $0x68] sm:$0xff] }
   0x6   :  { %176 = vmatprep.subr.bf16.mxu0 %v51_v5  ;;  %v55_v18 = vpack.c.bf16 %v45_v17, %v44_v16  ;;  %v56_v21 = vpack.c.bf16 %v47_v20, %v46_v19  ;;  %v48_v22 = vld [vmem:[%s302_s1 + $0x70] sm:$0xff]  ;;  %v49_v23 = vld [vmem:[%s302_s1 + $0x78] sm:$0xff]  ;;  %v195_v25 = vld [vmem:[%s303_s0 + $0x8] sm:$0xff]  }
   0x7   :  { %v57_v24 = vpack.c.bf16 %v49_v23, %v48_v22  ;;  %v163_v26 = vld [vmem:[%s304_s2] ss:$0 sm:$0xff]  ;;  %v147_v28 = vld [vmem:[%s305_s3 + $0x10] sm:$0xff]  ;;  %v148_v34 = vld [vmem:[%s305_s3 + $0x18] sm:$0xff] }
   0x8   :  { %v145_v31 = vld [vmem:[%s305_s3] sm:$0xff]  ;;  %v146_v38 = vld [vmem:[%s305_s3 + $0x8] sm:$0xff] }
   0x9   :  { %177 = vmatpush3.bf16.msra.mxu0 %v51_v5 }
   0xa   :  { %178 = vmatprep.subr.bf16.mxu0 %v52_v9 }
   0xd   :  { %179 = vmatpush3.bf16.msra.mxu0 %v52_v9 }
   0xe   :  { %180 = vmatprep.subr.bf16.mxu0 %v53_v12 }
  0x11   :  { %181 = vmatpush3.bf16.msra.mxu0 %v53_v12 }
  0x12   :  { %182 = vmatprep.subr.bf16.mxu0 %v54_v15 }
  0x15   :  { %183 = vmatpush3.bf16.msra.mxu0 %v54_v15 }
  0x16   :  { %184 = vmatprep.subr.bf16.mxu0 %v55_v18 }
  0x19   :  { %185 = vmatpush3.bf16.msra.mxu0 %v55_v18 }
  0x1a   :  { %186 = vmatprep.subr.bf16.mxu0 %v56_v21 }
  0x1d   :  { %187 = vmatpush3.bf16.msra.mxu0 %v56_v21 }
  0x1e   :  { %188 = vmatprep.subr.bf16.mxu0 %v57_v24 }
  0x21   :  { %189 = vmatpush3.bf16.msra.mxu0 %v57_v24 }
  0x24   :  { %191 = vmatmul.mubr.bf16.vlgmr.msra.gmra.mrb[0].mxu0 %v195_v25 }
  0xf7   :  { %v192_v27 = vpop.f32.mrb[0].mxu0 }
  0xf8   :  { %v143_v29 = vadd.f32 %v192_v27, %v163_v26  ;;  %v104_v30 = vpop.f32.mrb[1].mxu0 }
  0xf9   :  { %v141_v32 = vadd.f32 %v163_v26, %v104_v30  ;;  %v193_v33 = vpop.f32.mrb[2].mxu0 }
  0xfa   :  { %v151_v35 = vadd.f32 %v147_v28, %v143_v29  ;;  %v144_v36 = vadd.f32 %v193_v33, %v163_v26  ;;  %v107_v37 = vpop.f32.mrb[3].mxu0 }
  0xfb   :  { %v149_v39 = vadd.f32 %v145_v31, %v141_v32  ;;  %v142_v40 = vadd.f32 %v163_v26, %v107_v37 }
  0xfc   :  { %155 = vst [vmem:[%s306_s4 + $0x10] sm:$0xff] %v151_v35  ;;  %v152_v41 = vadd.f32 %v148_v34, %v144_v36 }
  0xfd   :  { %153 = vst [vmem:[%s306_s4] sm:$0xff] %v149_v39  ;;  %v150_v42 = vadd.f32 %v146_v38, %v142_v40 }
  0xfe   :  { %156 = vst [vmem:[%s306_s4 + $0x18] sm:$0xff] %v152_v41 }
  0xff   :  { %154 = vst [vmem:[%s306_s4 + $0x8] sm:$0xff] %v150_v42 }

// kernel: encoder_forward.21
= control target key start
LH: loop header
LB: loop body
LE: loop exit
PB: predicated region body
PF: predicated region fallthrough
CT: control target
= control target key end

     0   :  { %s550_s0 = inlined_call_operand.vmem [shape: bf16[32,256], index: 0, kind: input, shape index: {}]   ;;  %s551_s1 = inlined_call_operand.vmem [shape: f32[256,128], index: 1, kind: input, shape index: {}]   ;;  %s552_s2 = inlined_call_operand.vmem [shape: f32[1,128], index: 2, kind: input, shape index: {}]   ;;  %s553_s3 = inlined_call_operand.vmem [shape: f32[32,128], index: 3, kind: input, shape index: {}]   ;;  %s554_s4 = inlined_call_operand.vmem [shape: f32[1,128], index: 4, kind: input, shape index: {}]   ;;  %s555_s5 = inlined_call_operand.vmem [shape: f32[1,128], index: 5, kind: input, shape index: {}]   ;;  %s556_s6 = inlined_call_operand.hbm [shape: f32[32,128], index: 6, kind: output, shape index: {}]  }
   0x1   :  { %v57_v0 = vld [vmem:[%s551_s1 + $0x80] sm:$0xff]  ;;  %v58_v1 = vld [vmem:[%s551_s1 + $0x88] sm:$0xff]  ;;  %v59_v5 = vld [vmem:[%s551_s1 + $0x90] sm:$0xff] }
   0x2   :  { %v41_v2 = vld [vmem:[%s551_s1] sm:$0xff]  ;;  %v81_v3 = vpack.c.bf16 %v58_v1, %v57_v0  ;;  %v42_v4 = vld [vmem:[%s551_s1 + $0x8] sm:$0xff]  ;;  %v60_v6 = vld [vmem:[%s551_s1 + $0x98] sm:$0xff] }
   0x3   :  { %v73_v7 = vpack.c.bf16 %v42_v4, %v41_v2  ;;  %v82_v8 = vpack.c.bf16 %v60_v6, %v59_v5  ;;  %v43_v9 = vld [vmem:[%s551_s1 + $0x10] sm:$0xff]  ;;  %v44_v10 = vld [vmem:[%s551_s1 + $0x18] sm:$0xff]  ;;  %v61_v11 = vld [vmem:[%s551_s1 + $0xa0] sm:$0xff] }
   0x4   :  { %286 = vmatprep.subr.bf16.mxu0 %v81_v3  ;;  %314 = vmatprep.subr.bf16.mxu1 %v81_v3  ;;  %v62_v12 = vld [vmem:[%s551_s1 + $0xa8] sm:$0xff]  ;;  %v74_v13 = vpack.c.bf16 %v44_v10, %v43_v9  ;;  %v45_v15 = vld [vmem:[%s551_s1 + $0x20] sm:$0xff]  ;;  %v63_v17 = vld [vmem:[%s551_s1 + $0xb0] sm:$0xff] }
   0x5   :  { %287 = vmatpush3.bf16.msra.mxu0 %v73_v7  ;;  %322 = vmatpush3.bf16.msra.mxu1 %v73_v7  ;;  %v83_v14 = vpack.c.bf16 %v62_v12, %v61_v11  ;;  %v46_v16 = vld [vmem:[%s551_s1 + $0x28] sm:$0xff]  ;;  %v64_v18 = vld [vmem:[%s551_s1 + $0xb8] sm:$0xff]  ;;  %v47_v21 = vld [vmem:[%s551_s1 + $0x30] sm:$0xff] }
   0x6   :  { %288 = vmatprep.subr.bf16.mxu0 %v82_v8  ;;  %315 = vmatprep.subr.bf16.mxu1 %v82_v8  ;;  %v75_v19 = vpack.c.bf16 %v46_v16, %v45_v15  ;;  %v84_v20 = vpack.c.bf16 %v64_v18, %v63_v17  ;;  %v48_v22 = vld [vmem:[%s551_s1 + $0x38] sm:$0xff]  ;;  %v65_v23 = vld [vmem:[%s551_s1 + $0xc0] sm:$0xff]  ;;  %v66_v24 = vld [vmem:[%s551_s1 + $0xc8] sm:$0xff] }
   0x7   :  { %v335_v25 = vld [vmem:[%s550_s0 + $0x4] ss:$8 sps:$4 sm:$0xff]   ;;  %v76_v26 = vpack.c.bf16 %v48_v22, %v47_v21  ;;  %v85_v28 = vpack.c.bf16 %v66_v24, %v65_v23  ;;  %v338_v30 = vld [vmem:[%s550_s0 + $0x14] ss:$8 sps:$4 sm:$0xff]  }
   0x8   :  { %v49_v27 = vld [vmem:[%s551_s1 + $0x40] sm:$0xff]  ;;  %v50_v29 = vld [vmem:[%s551_s1 + $0x48] sm:$0xff] }
   0x9   :  { %289 = vmatpush3.bf16.msra.mxu0 %v74_v13  ;;  %323 = vmatpush3.bf16.msra.mxu1 %v74_v13 }
   0xa   :  { %290 = vmatprep.subr.bf16.mxu0 %v83_v14  ;;  %316 = vmatprep.subr.bf16.mxu1 %v83_v14 }
   0xd   :  { %291 = vmatpush3.bf16.msra.mxu0 %v75_v19  ;;  %324 = vmatpush3.bf16.msra.mxu1 %v75_v19 }
   0xe   :  { %292 = vmatprep.subr.bf16.mxu0 %v84_v20  ;;  %317 = vmatprep.subr.bf16.mxu1 %v84_v20 }
   0xf   :  { %11 = vsyncpa [#allocation4], 0  ;;  %v67_v31 = vld [vmem:[%s551_s1 + $0xd0] sm:$0xff]  ;;  %v68_v32 = vld [vmem:[%s551_s1 + $0xd8] sm:$0xff]  ;;  %141 = vmatprep.mubr.bf16.mxu0 %v335_v25  ;;  %149 = vmatprep.mubr.bf16.mxu1 %v338_v30  ;;  %v77_v33 = vpack.c.bf16 %v50_v29, %v49_v27  ;;  %s371_s7 = smov [#allocation3]  }
  0x10   :  { %v86_v34 = vpack.c.bf16 %v68_v32, %v67_v31  ;;  %v51_v35 = vld [vmem:[%s551_s1 + $0x50] sm:$0xff]  ;;  %v52_v36 = vld [vmem:[%s551_s1 + $0x58] sm:$0xff]  ;;  %v69_v37 = vld [vmem:[%s551_s1 + $0xe0] sm:$0xff] }
  0x11   :  { %293 = vmatpush3.bf16.msra.mxu0 %v76_v26  ;;  %325 = vmatpush3.bf16.msra.mxu1 %v76_v26  ;;  %v70_v38 = vld [vmem:[%s551_s1 + $0xe8] sm:$0xff]  ;;  %v78_v39 = vpack.c.bf16 %v52_v36, %v51_v35  ;;  %v53_v41 = vld [vmem:[%s551_s1 + $0x60] sm:$0xff]  ;;  %v71_v43 = vld [vmem:[%s551_s1 + $0xf0] sm:$0xff] }
  0x12   :  { %294 = vmatprep.subr.bf16.mxu0 %v85_v28  ;;  %318 = vmatprep.subr.bf16.mxu1 %v85_v28  ;;  %v87_v40 = vpack.c.bf16 %v70_v38, %v69_v37  ;;  %v54_v42 = vld [vmem:[%s551_s1 + $0x68] sm:$0xff]  ;;  %v72_v44 = vld [vmem:[%s551_s1 + $0xf8] sm:$0xff]  ;;  %v55_v47 = vld [vmem:[%s551_s1 + $0x70] sm:$0xff] }
  0x13   :  { %v79_v45 = vpack.c.bf16 %v54_v42, %v53_v41  ;;  %v88_v46 = vpack.c.bf16 %v72_v44, %v71_v43  ;;  %v56_v48 = vld [vmem:[%s551_s1 + $0x78] sm:$0xff]  ;;  %v333_v50 = vld [vmem:[%s550_s0] ss:$8 sps:$4 sm:$0xff]   ;;  %v186_v63 = vld [vmem:[%s553_s3 + $0x10] sm:$0xff] }
  0x14   :  { %v80_v49 = vpack.c.bf16 %v56_v48, %v55_v47  ;;  %v336_v51 = vld [vmem:[%s550_s0 + $0x10] ss:$8 sps:$4 sm:$0xff]   ;;  %v283_v55 = vld [vmem:[%s552_s2] ss:$0 sm:$0xff]  ;;  %v185_v10 = vld [vmem:[%s553_s3 + $0x8] sm:$0xff] }
  0x15   :  { %295 = vmatpush3.bf16.msra.mxu0 %v77_v33  ;;  %326 = vmatpush3.bf16.msra.mxu1 %v77_v33  ;;  %v184_v0 = vld [vmem:[%s553_s3] sm:$0xff]  ;;  %v187_v5 = vld [vmem:[%s553_s3 + $0x18] sm:$0xff] }
  0x16   :  { %296 = vmatprep.subr.bf16.mxu0 %v86_v34  ;;  %319 = vmatprep.subr.bf16.mxu1 %v86_v34  ;;  %v284_v42 = vld [vmem:[%s554_s4] ss:$0 sm:$0xff]  ;;  %s268_s4 = sshll.u32 %s371_s7, 4  ;;  %s269_s4 = int_to_ptr.vmem [resolvable:$true] %s268_s4 }
  0x17   :  { %v285_v44 = vld [vmem:[%s555_s5] ss:$0 sm:$0xff]  ;;  %s347_s5 = scalar_lea.vmem %s269_s4, 512  ;;  %p352_p1 = scmp.lt.s32.totalorder %s269_s4, %s269_s4 }
  0x18   :  { %p348_p0 = scmp.ne.s32.totalorder %s269_s4, %s347_s5  ;;  %p353_p2 = scmp.lt.s32.totalorder %s347_s5, %s347_s5 }
  0x19   :  { %297 = vmatpush3.bf16.msra.mxu0 %v78_v39  ;;  %327 = vmatpush3.bf16.msra.mxu1 %v78_v39 }
  0x1a   :  { %298 = vmatprep.subr.bf16.mxu0 %v87_v40  ;;  %320 = vmatprep.subr.bf16.mxu1 %v87_v40  ;;  %p354_p3 = por %p353_p2, %p352_p1 }
  0x1c   :  { %p355_p4 = pnand %p354_p3, %p348_p0 }
  0x1d   :  { %299 = vmatpush3.bf16.msra.mxu0 %v79_v45  ;;  %328 = vmatpush3.bf16.msra.mxu1 %v79_v45 }
  0x1e   :  { %300 = vmatprep.subr.bf16.mxu0 %v88_v46  ;;  %321 = vmatprep.subr.bf16.mxu1 %v88_v46 }
  0x21   :  { %301 = vmatpush3.bf16.msra.mxu0 %v80_v49  ;;  %329 = vmatpush3.bf16.msra.mxu1 %v80_v49 }
  0x24   :  { %142 = vmatmul.mubr.bf16.vlgmr.msra.gmra.mrb[0].mxu0 %v333_v50  ;;  %150 = vmatmul.mubr.bf16.vlgmr.msra.gmra.mrb[0].mxu1 %v336_v51 }
  0xf7   :  { %v302_v52 = vpop.f32.mrb[0].mxu0  ;;  %v308_v53 = vpop.f32.mrb[0].mxu1 }
  0xf8   :  { %v303_v54 = vpop.f32.mrb[1].mxu0  ;;  %v309_v56 = vpop.f32.mrb[1].mxu1 }
  0xf9   :  { %v304_v57 = vadd.f32 %v303_v54, %v302_v52  ;;  %v310_v58 = vadd.f32 %v309_v56, %v308_v53  ;;  %v305_v59 = vpop.f32.mrb[2].mxu0  ;;  %v311_v60 = vpop.f32.mrb[2].mxu1 }
  0xfa   :  { %v306_v61 = vpop.f32.mrb[3].mxu0  ;;  %v312_v62 = vpop.f32.mrb[3].mxu1 }
  0xfb   :  { %v180_v1 = vadd.f32 %v304_v57, %v283_v55  ;;  %v182_v2 = vadd.f32 %v310_v58, %v283_v55  ;;  %v307_v3 = vadd.f32 %v306_v61, %v305_v59  ;;  %v313_v4 = vadd.f32 %v312_v62, %v311_v60 }
  0xfd   :  { %v181_v6 = vadd.f32 %v307_v3, %v283_v55  ;;  %v183_v7 = vadd.f32 %v313_v4, %v283_v55  ;;  %v190_v8 = vadd.f32 %v186_v63, %v182_v2  ;;  %v188_v9 = vadd.f32 %v184_v0, %v180_v1 }
  0xff   :  { %196 = vadd.xlane.f32.xlu1 %v190_v8  ;;  %192 = vadd.xlane.f32.xlu0 %v188_v9  ;;  %v191_v11 = vadd.f32 %v187_v5, %v183_v7  ;;  %v189_v12 = vadd.f32 %v185_v10, %v181_v6 }
 0x103   :  { %198 = vadd.xlane.f32.xlu1 %v191_v11  ;;  %194 = vadd.xlane.f32.xlu0 %v189_v12 }
 0x18c   :  { %v197_v13 = vpop.xlane.xlu1 %196  ;;  %v193_v14 = vpop.xlane.xlu0 %192 }
 0x18d   :  { %v203_v15 = vmul.f32 0.0078125, %v197_v13  ;;  %v201_v16 = vmul.f32 0.0078125, %v193_v14 }
 0x18f   :  { %v205_v17 = vsub.f32 %v188_v9, %v201_v16  ;;  %v207_v20 = vsub.f32 %v190_v8, %v203_v15 }
 0x190   :  { %v199_v18 = vpop.xlane.xlu1 %198  ;;  %v195_v19 = vpop.xlane.xlu0 %194 }
 0x191   :  { %v204_v21 = vmul.f32 0.0078125, %v199_v18  ;;  %v202_v22 = vmul.f32 0.0078125, %v195_v19  ;;  %v209_v23 = vmul.f32 %v205_v17, %v205_v17  ;;  %v211_v26 = vmul.f32 %v207_v20, %v207_v20 }
 0x193   :  { %v206_v24 = vsub.f32 %v189_v12, %v202_v22  ;;  %213 = vadd.xlane.f32.xlu0 %v209_v23  ;;  %v208_v25 = vsub.f32 %v191_v11, %v204_v21 }
 0x195   :  { %v210_v27 = vmul.f32 %v206_v24, %v206_v24  ;;  %v212_v28 = vmul.f32 %v208_v25, %v208_v25 }
 0x197   :  { %217 = vadd.xlane.f32.xlu0 %v211_v26  ;;  %215 = vadd.xlane.f32.xlu1 %v210_v27 }
 0x19b   :  { %219 = vadd.xlane.f32.xlu1 %v212_v28 }
 0x220   :  { %v214_v29 = vpop.xlane.xlu0 %213 }
 0x221   :  { %v221_v30 = vmul.f32 0.0078125, %v214_v29 }
 0x223   :  { %v225_v31 = vadd.f32 1e-05, %v221_v30 }
 0x224   :  { %v216_v32 = vpop.xlane.xlu1 %215  ;;  %v218_v33 = vpop.xlane.xlu0 %217 }
 0x225   :  { %339 = vrsqrt.f32 %v225_v31  ;;  %v222_v34 = vmul.f32 0.0078125, %v216_v32  ;;  %v223_v35 = vmul.f32 0.0078125, %v218_v33 }
 0x227   :  { %v226_v36 = vadd.f32 1e-05, %v222_v34  ;;  %v227_v37 = vadd.f32 1e-05, %v223_v35 }
 0x228   :  { %v220_v38 = vpop.xlane.xlu1 %219 }
 0x229   :  { %341 = vrsqrt.f32 %v226_v36  ;;  %v224_v39 = vmul.f32 0.0078125, %v220_v38 }
 0x22a   :  { %343 = vrsqrt.f32 %v227_v37 }
 0x22b   :  { %v228_v40 = vadd.f32 1e-05, %v224_v39 }
 0x22d   :  { %345 = vrsqrt.f32 %v228_v40 }
 0x22f   :  { %v340_v41 = vpop.eup %339 }
 0x230   :  { %v233_v43 = vmul.f32 %v340_v41, %v205_v17 }
 0x232   :  { %v244_v45 = vmul.f32 %v284_v42, %v233_v43 }
 0x233   :  { %v342_v46 = vpop.eup %341 }
 0x234   :  { %v344_v47 = vpop.eup %343  ;;  %v234_v48 = vmul.f32 %v342_v46, %v206_v24  ;;  %v255_v49 = vadd.f32 %v285_v44, %v244_v45 }
 0x235   :  { %v235_v50 = vmul.f32 %v344_v47, %v207_v20 }
 0x236   :  { %v245_v51 = vmul.f32 %v284_v42, %v234_v48  ;;  %259 = vst [vmem:[#allocation3] sm:$0xff] %v255_v49 }
 0x237   :  { %v346_v52 = vpop.eup %345  ;;  %v246_v53 = vmul.f32 %v284_v42, %v235_v50 }
 0x238   :  { %v236_v54 = vmul.f32 %v346_v52, %v208_v25  ;;  %v256_v55 = vadd.f32 %v285_v44, %v245_v51 }
 0x239   :  { %v257_v56 = vadd.f32 %v285_v44, %v246_v53 }
 0x23a   :  { %v247_v57 = vmul.f32 %v284_v42, %v236_v54  ;;  %260 = vst [vmem:[#allocation3 + $0x8] sm:$0xff] %v256_v55 }
 0x23b   :  { %261 = vst [vmem:[#allocation3 + $0x10] sm:$0xff] %v257_v56 }
 0x23c   :  { %v258_v58 = vadd.f32 %v285_v44, %v247_v57 }
 0x23e   :  { %262 = vst [vmem:[#allocation3 + $0x18] sm:$0xff] %v258_v58 }
 0x23f   :  { %358 = shalt.err (!%p355_p4)
}
 0x240   :  { %s359_s10 = scalar_lea.hbm %s556_s6, 512 }
 0x241   :  { %p360_p5 = scmp.ne.s32.totalorder %s556_s6, %s359_s10  ;;  %p363_p6 = scmp.lt.u32.totalorder %s359_s10, %s556_s6 }
 0x243   :  { %p365_p7 = pnand %p363_p6, %p360_p5 }
 0x245   :  { %368 = shalt.err (!%p365_p7)
}
 0x246   :  { %s372_s15 = smov 128   ;;  %s373_s16 = smov 8  }
 0x247   :  { %274 = dma.vmem_to_hbm [thread:$0]  %s269_s4, 512, %s556_s6, [#allocation4], %s372_s15, %s372_s15, %s373_s16  }
 0x248   :  { %369 = dma.done.wait [#allocation4], 512  }
 0x249   :  { %370 = vsyncadd [#allocation4], 4294966784 }
 0x24a   :  { %278 = vsyncpa [#allocation4], 1 }

</bundles_post_ra>
